<compile_context>
chip_gen: v5e
topology: v5e:2x2
jax: 0.10.0
libtpu: 0.0.40
codegen_flags: <defaults>
</compile_context>

<pallas_src>
import numpy as np
import jax
import jax.numpy as jnp
from jax.experimental import pallas as pl
from jax.experimental.pallas import tpu as pltpu


# ----------------------------------------------------------------------------
# Kernel: a stack of (dense matmul + bias + ReLU) layers; activations stay in
# VMEM / vregs for the whole forward.  One batch tile per grid step.
# ----------------------------------------------------------------------------
def _make_fused_kernel(num_layers):
    def kernel(*refs):
        x_ref = refs[0]
        o_ref = refs[-1]
        params = refs[1:-1]                                   # (weight, bias) per layer
        act = x_ref[...].astype(jnp.bfloat16)                 # bf16 MXU operands
        for li in range(num_layers):
            w_ref = params[2 * li]
            b_ref = params[2 * li + 1]
            acc = jnp.dot(act, w_ref[...], preferred_element_type=jnp.float32)
            act_f32 = jnp.maximum(acc + b_ref[...], 0.0)      # f32 epilogue (v5e-safe)
            if li + 1 < num_layers:
                act = act_f32.astype(jnp.bfloat16)
            else:
                o_ref[...] = act_f32
    return kernel


def _conv_as_dense(conv_w, h, w, stride):
    """Fold Conv2d(kernel, stride, VALID) over an (h, w, cin) NHWC input into a dense
    matrix D such that y_flat = x_flat @ D, with both flats in (pixel, channel) order."""
    kh, kw, ci, co = conv_w.shape
    ho = (h - kh) // stride + 1
    wo = (w - kw) // stride + 1
    d = np.zeros((h * w * ci, ho * wo * co), np.float32)
    wnp = np.asarray(conv_w, np.float32)
    for oh in range(ho):
        for ow in range(wo):
            ob = (oh * wo + ow) * co
            for i in range(kh):
                for j in range(kw):
                    ib = ((stride * oh + i) * w + (stride * ow + j)) * ci
                    d[ib:ib + ci, ob:ob + co] = wnp[i, j]
    return d, ho, wo


def _round_up(x, m):
    return ((x + m - 1) // m) * m


# ----------------------------------------------------------------------------
# SharedConvModule forward (Pallas version)
# ----------------------------------------------------------------------------
class SharedConvModulePallas:
    def __init__(self, in_channels, layers_out_channels, strides, kernel_size, key):
        assert len(strides) == len(layers_out_channels) - 1
        self.in_channels = in_channels
        self.layers_out_channels = layers_out_channels
        self.strides = strides
        self.kernel_size = kernel_size

        # Matches PyTorch: zip(layers_out_channels, strides) -> only the first
        # len(strides) entries become conv layers.  Weights stored HWIO.
        self.conv_params = []
        prev = in_channels
        for out_ch, _ in zip(layers_out_channels, strides):
            key, kw_, kb_ = jax.random.split(key, 3)
            w = 0.1 * jax.random.normal(
                kw_, (kernel_size, kernel_size, prev, out_ch), jnp.float32)
            b = 0.1 * jax.random.normal(kb_, (out_ch,), jnp.float32)
            self.conv_params.append((w, b))
            prev = out_ch

        feat = layers_out_channels[-1]
        key, kw_, kb_ = jax.random.split(key, 3)
        self.lin_w = 0.1 * jax.random.normal(kw_, (feat, feat), jnp.float32)
        self.lin_b = 0.1 * jax.random.normal(kb_, (feat,), jnp.float32)

        self._fwd_cache = {}

    # ---- build a jitted, shape-specialized fused forward ----
    def _build_forward(self, x_shape):
        n, cin, h, w = x_shape
        assert cin == self.in_channels
        feat = self.layers_out_channels[-1]
        k0 = h * w * cin

        # ---- fold every layer into a dense (K, N_pad) matmul + (1, N_pad) bias ----
        consts = []
        layer_dims = []
        cur_h, cur_w, cur_c = h, w, cin
        k_dim = k0                                       # flat width of this layer's input
        for (cw, cb), s in zip(self.conv_params, self.strides):
            d_np, ho, wo = _conv_as_dense(cw, cur_h, cur_w, s)
            co = cw.shape[3]
            n_real = ho * wo * co
            n_pad = _round_up(n_real, 128)               # lane-dense output width
            d_pad = np.zeros((k_dim, n_pad), np.float32)
            d_pad[:d_np.shape[0], :n_real] = d_np        # extra K rows (prev padding) stay 0
            b_pad = np.zeros((1, n_pad), np.float32)
            b_pad[0, :n_real] = np.tile(np.asarray(cb, np.float32), ho * wo)
            consts += [jnp.asarray(d_pad, jnp.bfloat16), jnp.asarray(b_pad, jnp.float32)]
            layer_dims.append((k_dim, n_pad))
            cur_h, cur_w, cur_c = ho, wo, co
            k_dim = n_pad

        p_last, c_last = cur_h * cur_w, cur_c
        assert p_last * c_last == feat, (
            "flattened conv output size must equal layers_out_channels[-1] "
            f"({p_last * c_last} vs {feat})")

        # Final Linear: fold PyTorch's NCHW flatten order into the weight rows,
        #   wl_folded[p*C + c, :] = lin_w[c*P + p, :], then zero-pad to lane-dense shapes.
        feat_pad = _round_up(feat, 128)
        wl = np.asarray(self.lin_w, np.float32).reshape(c_last, p_last, feat)
        wl = np.transpose(wl, (1, 0, 2)).reshape(p_last * c_last, feat)
        wl_pad = np.zeros((k_dim, feat_pad), np.float32)
        wl_pad[:p_last * c_last, :feat] = wl
        bl_pad = np.zeros((1, feat_pad), np.float32)
        bl_pad[0, :feat] = np.asarray(self.lin_b, np.float32)
        consts += [jnp.asarray(wl_pad, jnp.bfloat16), jnp.asarray(bl_pad, jnp.float32)]
        layer_dims.append((k_dim, feat_pad))

        # ---- batch tiling ----
        if n <= 128:
            b_tile, n_pad_batch = n, n                   # one grid step, block == full dim
        else:
            b_tile = 128                                 # 8-sublane aligned; grid >= 2 (v7x)
            n_pad_batch = _round_up(n, b_tile)
        num_tiles = n_pad_batch // b_tile

        # ---- explicit VMEM budget ----
        const_bytes = sum(int(np.prod(c.shape)) * c.dtype.itemsize for c in consts)
        block_bytes = const_bytes + b_tile * k0 * 4 + b_tile * feat_pad * 4
        working_set = 2 * block_bytes                    # double-buffered by the pipeline
        if working_set > 56 * 1024 * 1024:
            raise ValueError(
                f"fused conv-as-matmul working set ({working_set / 2**20:.1f} MiB) would "
                "not fit v7x's 64 MiB VMEM; reduce spatial size or use strided-slice taps")
        vmem_limit = min(64 * 1024 * 1024,
                         max(32 * 1024 * 1024, working_set + 4 * 1024 * 1024))

        flops = sum(2 * n_pad_batch * k * nn_ for k, nn_ in layer_dims)
        bytes_accessed = (n_pad_batch * k0 * 4 + const_bytes + n_pad_batch * feat_pad * 4)
        cost = pl.CostEstimate(flops=flops, transcendentals=0,
                               bytes_accessed=bytes_accessed)

        in_specs = [pl.BlockSpec((b_tile, k0), lambda b: (b, 0))]
        for c in consts:
            in_specs.append(pl.BlockSpec(c.shape, lambda b: (0, 0)))
        out_specs = pl.BlockSpec((b_tile, feat_pad), lambda b: (b, 0))

        call = pl.pallas_call(
            _make_fused_kernel(len(self.conv_params) + 1),
            out_shape=jax.ShapeDtypeStruct((n_pad_batch, feat_pad), jnp.float32),
            grid=(num_tiles,),
            in_specs=in_specs,
            out_specs=out_specs,
            compiler_params=pltpu.CompilerParams(
                dimension_semantics=("parallel",),
                vmem_limit_bytes=int(vmem_limit)),
            cost_estimate=cost,
        )

        def forward(x_nchw):
            # NCHW -> flat (N, H*W*Cin) in (pixel, channel) order (boundary-only plumbing).
            x_p = jnp.transpose(x_nchw, (0, 2, 3, 1)).reshape(n, k0)
            if n_pad_batch != n:
                x_p = jnp.pad(x_p, ((0, n_pad_batch - n), (0, 0)))
            out = call(x_p.astype(jnp.float32), *consts)
            return out[:n, :feat]

        return jax.jit(forward)

    def __call__(self, x_nchw):
        assert x_nchw.ndim == 4
        key = tuple(int(d) for d in x_nchw.shape)
        if key not in self._fwd_cache:
            self._fwd_cache[key] = self._build_forward(key)
        return self._fwd_cache[key](x_nchw)

    # Pure-JAX reference (no Pallas) for validation.
    def reference(self, x_nchw):
        x = jnp.transpose(x_nchw, (0, 2, 3, 1))
        for (w, b), s in zip(self.conv_params, self.strides):
            y = jax.lax.conv_general_dilated(
                x, w, window_strides=(s, s), padding="VALID",
                dimension_numbers=("NHWC", "HWIO", "NHWC"))
            x = jax.nn.relu(y + b)
        x = jnp.transpose(x, (0, 3, 1, 2)).reshape(x.shape[0], -1)   # NCHW flatten
        return jax.nn.relu(x @ self.lin_w + self.lin_b)


# TODO(synk): the PyTorch forward's logging.info / self.conv_shapes bookkeeping side
# effects have no kernel equivalent.

if __name__ == "__main__":
    # batch=2, in_channels=4, spatial 16x16, kernel=3, strides=[2,2].
    # Conv stack: 4->8 (16->7), 8->16 (7->3); flatten = 16*3*3 = 144, so
    # layers_out_channels[-1] = 144 for the Linear(144, 144), as the module requires.
    in_channels = 4
    layers_out_channels = [8, 16, 144]
    strides = [2, 2]
    kernel_size = 3

    key = jax.random.PRNGKey(0)
    key_params, key_x = jax.random.split(key)

    module = SharedConvModulePallas(
        in_channels, layers_out_channels, strides, kernel_size, key_params)

    x = jax.random.normal(key_x, (2, in_channels, 16, 16), jnp.float32)

    out = jax.block_until_ready(module(x))
    assert out.shape == (2, layers_out_channels[-1]), out.shape

    ref = jax.block_until_ready(module.reference(x))
    # bf16 MXU operands vs f32 reference -> slightly looser tolerance (documented above).
    if not jnp.allclose(out, ref, atol=3e-2, rtol=3e-2):
        raise AssertionError("Pallas output does not match JAX reference")

    print("KERNEL_OK")
</pallas_src>

<mosaic_0001>
module attributes {stable_mosaic.version = 11 : i64} {
  func.func @kernel(%arg0: i32, %arg1: memref<2x1024xf32, #tpu.memory_space<vmem>>, %arg2: memref<1024x512xbf16, #tpu.memory_space<vmem>>, %arg3: memref<1x512xf32, #tpu.memory_space<vmem>>, %arg4: memref<512x256xbf16, #tpu.memory_space<vmem>>, %arg5: memref<1x256xf32, #tpu.memory_space<vmem>>, %arg6: memref<256x256xbf16, #tpu.memory_space<vmem>>, %arg7: memref<1x256xf32, #tpu.memory_space<vmem>>, %arg8: memref<2x256xf32, #tpu.memory_space<vmem>>) attributes {dimension_semantics = [#tpu.dimension_semantics<parallel>], iteration_bounds = array<i64: 1>, scalar_prefetch = 0 : i64, scratch_operands = 0 : i64, tpu.core_type = #tpu.core_type<tc>, window_params = [{transform_indices = @transform_0, window_bounds = array<i64: 2, 1024>}, {pipeline_mode = #tpu.pipeline_mode<synchronous>, transform_indices = @transform_1, window_bounds = array<i64: 1024, 512>}, {pipeline_mode = #tpu.pipeline_mode<synchronous>, transform_indices = @transform_2, window_bounds = array<i64: 1, 512>}, {pipeline_mode = #tpu.pipeline_mode<synchronous>, transform_indices = @transform_3, window_bounds = array<i64: 512, 256>}, {pipeline_mode = #tpu.pipeline_mode<synchronous>, transform_indices = @transform_4, window_bounds = array<i64: 1, 256>}, {pipeline_mode = #tpu.pipeline_mode<synchronous>, transform_indices = @transform_5, window_bounds = array<i64: 256, 256>}, {pipeline_mode = #tpu.pipeline_mode<synchronous>, transform_indices = @transform_6, window_bounds = array<i64: 1, 256>}, {transform_indices = @transform_7, window_bounds = array<i64: 2, 256>}]} {
    %c0 = arith.constant 0 : index
    %c0_0 = arith.constant 0 : index
    %0 = vector.load %arg1[%c0, %c0_0] : memref<2x1024xf32, #tpu.memory_space<vmem>>, vector<2x1024xf32>
    %1 = arith.truncf %0 : vector<2x1024xf32> to vector<2x1024xbf16>
    %c0_1 = arith.constant 0 : index
    %c0_2 = arith.constant 0 : index
    %2 = vector.load %arg2[%c0_1, %c0_2] : memref<1024x512xbf16, #tpu.memory_space<vmem>>, vector<1024x512xbf16>
    %cst = arith.constant dense<0.000000e+00> : vector<2x512xf32>
    %3 = tpu.matmul %1, %2, %cst {dimension_numbers = #tpu.dot_dimension_numbers<[1], [0], [0], [1], [0, 0, 1, 1], [], []>} : vector<2x1024xbf16>, vector<1024x512xbf16>, vector<2x512xf32> -> vector<2x512xf32>
    %c0_3 = arith.constant 0 : index
    %c0_4 = arith.constant 0 : index
    %4 = vector.load %arg3[%c0_3, %c0_4] : memref<1x512xf32, #tpu.memory_space<vmem>>, vector<1x512xf32>
    %5 = vector.broadcast %4 : vector<1x512xf32> to vector<2x512xf32>
    %6 = arith.addf %3, %5 : vector<2x512xf32>
    %cst_5 = arith.constant 0.000000e+00 : f32
    %7 = vector.broadcast %cst_5 : f32 to vector<2x512xf32>
    %8 = arith.maximumf %6, %7 : vector<2x512xf32>
    %9 = arith.truncf %8 : vector<2x512xf32> to vector<2x512xbf16>
    %c0_6 = arith.constant 0 : index
    %c0_7 = arith.constant 0 : index
    %10 = vector.load %arg4[%c0_6, %c0_7] : memref<512x256xbf16, #tpu.memory_space<vmem>>, vector<512x256xbf16>
    %cst_8 = arith.constant dense<0.000000e+00> : vector<2x256xf32>
    %11 = tpu.matmul %9, %10, %cst_8 {dimension_numbers = #tpu.dot_dimension_numbers<[1], [0], [0], [1], [0, 0, 1, 1], [], []>} : vector<2x512xbf16>, vector<512x256xbf16>, vector<2x256xf32> -> vector<2x256xf32>
    %c0_9 = arith.constant 0 : index
    %c0_10 = arith.constant 0 : index
    %12 = vector.load %arg5[%c0_9, %c0_10] : memref<1x256xf32, #tpu.memory_space<vmem>>, vector<1x256xf32>
    %13 = vector.broadcast %12 : vector<1x256xf32> to vector<2x256xf32>
    %14 = arith.addf %11, %13 : vector<2x256xf32>
    %cst_11 = arith.constant 0.000000e+00 : f32
    %15 = vector.broadcast %cst_11 : f32 to vector<2x256xf32>
    %16 = arith.maximumf %14, %15 : vector<2x256xf32>
    %17 = arith.truncf %16 : vector<2x256xf32> to vector<2x256xbf16>
    %c0_12 = arith.constant 0 : index
    %c0_13 = arith.constant 0 : index
    %18 = vector.load %arg6[%c0_12, %c0_13] : memref<256x256xbf16, #tpu.memory_space<vmem>>, vector<256x256xbf16>
    %cst_14 = arith.constant dense<0.000000e+00> : vector<2x256xf32>
    %19 = tpu.matmul %17, %18, %cst_14 {dimension_numbers = #tpu.dot_dimension_numbers<[1], [0], [0], [1], [0, 0, 1, 1], [], []>} : vector<2x256xbf16>, vector<256x256xbf16>, vector<2x256xf32> -> vector<2x256xf32>
    %c0_15 = arith.constant 0 : index
    %c0_16 = arith.constant 0 : index
    %20 = vector.load %arg7[%c0_15, %c0_16] : memref<1x256xf32, #tpu.memory_space<vmem>>, vector<1x256xf32>
    %21 = vector.broadcast %20 : vector<1x256xf32> to vector<2x256xf32>
    %22 = arith.addf %19, %21 : vector<2x256xf32>
    %cst_17 = arith.constant 0.000000e+00 : f32
    %23 = vector.broadcast %cst_17 : f32 to vector<2x256xf32>
    %24 = arith.maximumf %22, %23 : vector<2x256xf32>
    %c0_18 = arith.constant 0 : index
    %c0_19 = arith.constant 0 : index
    %25 = vector.load %arg8[%c0_18, %c0_19] : memref<2x256xf32, #tpu.memory_space<vmem>>, vector<2x256xf32>
    tpu.vector_store %arg8[%c0_18, %c0_19], %24 {strides = array<i32>} : memref<2x256xf32, #tpu.memory_space<vmem>>, vector<2x256xf32>,
    return
  }
  func.func @transform_0(%arg0: i32) -> (i32, i32) {
    %c0_i32 = arith.constant 0 : i32
    %c0_i32_0 = arith.constant 0 : i32
    return %arg0, %c0_i32 : i32, i32
  }
  func.func @transform_1(%arg0: i32) -> (i32, i32) {
    %c0_i32 = arith.constant 0 : i32
    %c0_i32_0 = arith.constant 0 : i32
    %c0_i32_1 = arith.constant 0 : i32
    return %c0_i32, %c0_i32_0 : i32, i32
  }
  func.func @transform_2(%arg0: i32) -> (i32, i32) {
    %c0_i32 = arith.constant 0 : i32
    %c0_i32_0 = arith.constant 0 : i32
    %c0_i32_1 = arith.constant 0 : i32
    return %c0_i32, %c0_i32_0 : i32, i32
  }
  func.func @transform_3(%arg0: i32) -> (i32, i32) {
    %c0_i32 = arith.constant 0 : i32
    %c0_i32_0 = arith.constant 0 : i32
    %c0_i32_1 = arith.constant 0 : i32
    return %c0_i32, %c0_i32_0 : i32, i32
  }
  func.func @transform_4(%arg0: i32) -> (i32, i32) {
    %c0_i32 = arith.constant 0 : i32
    %c0_i32_0 = arith.constant 0 : i32
    %c0_i32_1 = arith.constant 0 : i32
    return %c0_i32, %c0_i32_0 : i32, i32
  }
  func.func @transform_5(%arg0: i32) -> (i32, i32) {
    %c0_i32 = arith.constant 0 : i32
    %c0_i32_0 = arith.constant 0 : i32
    %c0_i32_1 = arith.constant 0 : i32
    return %c0_i32, %c0_i32_0 : i32, i32
  }
  func.func @transform_6(%arg0: i32) -> (i32, i32) {
    %c0_i32 = arith.constant 0 : i32
    %c0_i32_0 = arith.constant 0 : i32
    %c0_i32_1 = arith.constant 0 : i32
    return %c0_i32, %c0_i32_0 : i32, i32
  }
  func.func @transform_7(%arg0: i32) -> (i32, i32) {
    %c0_i32 = arith.constant 0 : i32
    %c0_i32_0 = arith.constant 0 : i32
    return %arg0, %c0_i32 : i32, i32
  }
}

</mosaic_0001>

<bundles_post_ra>
// kernel: forward.1
= control target key start
LH: loop header
LB: loop body
LE: loop exit
PB: predicated region body
PF: predicated region fallthrough
CT: control target
= control target key end

     0   :  { %12 = vsyncpa [#allocation3], 0  ;;  %s5373_s0 = inlined_call_operand.vmem [shape: f32[2,1024], index: 0, kind: input, shape index: {}]   ;;  %s5374_s1 = inlined_call_operand.hbm [shape: bf16[1024,512], index: 1, kind: input, shape index: {}]   ;;  %s5375_s2 = inlined_call_operand.vmem [shape: f32[1,512], index: 2, kind: input, shape index: {}]   ;;  %s5376_s3 = inlined_call_operand.vmem [shape: bf16[512,256], index: 3, kind: input, shape index: {}]   ;;  %s5377_s4 = inlined_call_operand.vmem [shape: f32[1,256], index: 4, kind: input, shape index: {}]   ;;  %s5378_s5 = inlined_call_operand.vmem [shape: bf16[256,256], index: 5, kind: input, shape index: {}]   ;;  %s5379_s6 = inlined_call_operand.vmem [shape: f32[1,256], index: 6, kind: input, shape index: {}]   ;;  %s5380_s7 = inlined_call_operand.hbm [shape: f32[2,256], index: 7, kind: output, shape index: {}]  }
   0x1   :  { %13 = vsyncpa [#allocation4], 0  ;;  %s20_s26 = sshll.u32 %s5374_s1, 4  ;;  %s4635_s27 = smov [#allocation2]   ;;  %s21_s26 = int_to_ptr.hbm [resolvable:$true] %s20_s26 }
   0x2   :  { %s22_s28 = sshll.u32 %s4635_s27, 4  ;;  %s4636_s29 = smov 256   ;;  %s23_s28 = int_to_ptr.vmem [resolvable:$true] %s22_s28 }
   0x3   :  { %s4637_s30 = smov 16  }
   0x4   :  { %28 = dma.hbm_to_vmem [thread:$0]  %s21_s26, 32768, %s23_s28, [#allocation3], %s4636_s29, %s4636_s29, %s4637_s30  }
   0x5   :  { %4631 = dma.done.wait [#allocation3], 32768  }
   0x6   :  { %4632 = vsyncadd [#allocation3], 4294934528  ;;  %v2932_v0 = vld [vmem:[#allocation2 + $0xe0] sm:$0xf]  ;;  %v4256_v1 = vld [vmem:[#allocation2 + $0xec] sm:$0xf0] }
   0x7   :  { %v3060_v2 = vld [vmem:[#allocation2 + $0x1e0] sm:$0xf]  ;;  %v2933_v3 = vor.u32 %v4256_v1, %v2932_v0  ;;  %v4288_v4 = vld [vmem:[#allocation2 + $0x1ec] sm:$0xf0]  ;;  %s4638_s9 = smov [#allocation5]   ;;  %s2808_s12 = sshll.u32 %s5380_s7, 4  ;;  %s2809_s12 = int_to_ptr.hbm [resolvable:$true] %s2808_s12 }
   0x8   :  { %v3188_v5 = vld [vmem:[#allocation2 + $0x2e0] sm:$0xf]  ;;  %v4320_v6 = vld [vmem:[#allocation2 + $0x2ec] sm:$0xf0]  ;;  %v3061_v7 = vor.u32 %v4288_v4, %v3060_v2  ;;  %s2806_s10 = sshll.u32 %s4638_s9, 4  ;;  %vm2797_vm0 = vcmask 1041408   ;;  %s2807_s10 = int_to_ptr.vmem [resolvable:$true] %s2806_s10 }
   0x9   :  { %v3189_v8 = vor.u32 %v4320_v6, %v3188_v5  ;;  %v3316_v9 = vld [vmem:[#allocation2 + $0x3e0] sm:$0xf]  ;;  %v4352_v10 = vld [vmem:[#allocation2 + $0x3ec] sm:$0xf0]  ;;  %1620 = vmatpush.bf16.msra.mxu0 %v2933_v3 }
   0xa   :  { %v2916_v11 = vld [vmem:[#allocation2 + $0xc0] sm:$0xf]  ;;  %v3317_v12 = vor.u32 %v4352_v10, %v3316_v9  ;;  %v4252_v13 = vld [vmem:[#allocation2 + $0xcc] sm:$0xf0]  ;;  %1633 = vmatpush.bf16.msra.mxu1 %v3061_v7 }
   0xb   :  { %v3044_v14 = vld [vmem:[#allocation2 + $0x1c0] sm:$0xf]  ;;  %v4284_v15 = vld [vmem:[#allocation2 + $0x1cc] sm:$0xf0]  ;;  %1646 = vmatpush.bf16.msra.mxu2 %v3189_v8  ;;  %v2917_v16 = vor.u32 %v4252_v13, %v2916_v11 }
   0xc   :  { %v3045_v17 = vor.u32 %v4284_v15, %v3044_v14  ;;  %v3172_v18 = vld [vmem:[#allocation2 + $0x2c0] sm:$0xf]  ;;  %v4316_v19 = vld [vmem:[#allocation2 + $0x2cc] sm:$0xf0]  ;;  %1659 = vmatpush.bf16.msra.mxu3 %v3317_v12 }
   0xd   :  { %v3300_v20 = vld [vmem:[#allocation2 + $0x3c0] sm:$0xf]  ;;  %v3173_v21 = vor.u32 %v4316_v19, %v3172_v18  ;;  %v4348_v22 = vld [vmem:[#allocation2 + $0x3cc] sm:$0xf0]  ;;  %1621 = vmatpush.bf16.msra.mxu0 %v2917_v16 }
   0xe   :  { %v2900_v23 = vld [vmem:[#allocation2 + $0xa0] sm:$0xf]  ;;  %v4248_v24 = vld [vmem:[#allocation2 + $0xac] sm:$0xf0]  ;;  %v3301_v25 = vor.u32 %v4348_v22, %v3300_v20  ;;  %1634 = vmatpush.bf16.msra.mxu1 %v3045_v17 }
   0xf   :  { %v3028_v26 = vld [vmem:[#allocation2 + $0x1a0] sm:$0xf]  ;;  %v4280_v27 = vld [vmem:[#allocation2 + $0x1ac] sm:$0xf0]  ;;  %v2901_v29 = vor.u32 %v4248_v24, %v2900_v23  ;;  %1647 = vmatpush.bf16.msra.mxu2 %v3173_v21 }
  0x10   :  { %v3156_v28 = vld [vmem:[#allocation2 + $0x2a0] sm:$0xf]  ;;  %v4312_v30 = vld [vmem:[#allocation2 + $0x2ac] sm:$0xf0]  ;;  %v3029_v33 = vor.u32 %v4280_v27, %v3028_v26  ;;  %1660 = vmatpush.bf16.msra.mxu3 %v3301_v25 }
  0x11   :  { %v3284_v31 = vld [vmem:[#allocation2 + $0x3a0] sm:$0xf]  ;;  %v4344_v32 = vld [vmem:[#allocation2 + $0x3ac] sm:$0xf0]  ;;  %v3157_v34 = vor.u32 %v4312_v30, %v3156_v28  ;;  %1622 = vmatpush.bf16.msra.mxu0 %v2901_v29 }
  0x12   :  { %v2884_v35 = vld [vmem:[#allocation2 + $0x80] sm:$0xf]  ;;  %v4244_v36 = vld [vmem:[#allocation2 + $0x8c] sm:$0xf0]  ;;  %v3285_v38 = vor.u32 %v4344_v32, %v3284_v31  ;;  %1635 = vmatpush.bf16.msra.mxu1 %v3029_v33 }
  0x13   :  { %v3012_v37 = vld [vmem:[#allocation2 + $0x180] sm:$0xf]  ;;  %v4276_v39 = vld [vmem:[#allocation2 + $0x18c] sm:$0xf0]  ;;  %v2885_v44 = vor.u32 %v4244_v36, %v2884_v35  ;;  %1648 = vmatpush.bf16.msra.mxu2 %v3157_v34 }
  0x14   :  { %v3140_v40 = vld [vmem:[#allocation2 + $0x280] sm:$0xf]  ;;  %v4308_v41 = vld [vmem:[#allocation2 + $0x28c] sm:$0xf0]  ;;  %v3013_v45 = vor.u32 %v4276_v39, %v3012_v37  ;;  %1661 = vmatpush.bf16.msra.mxu3 %v3285_v38 }
  0x15   :  { %v3268_v42 = vld [vmem:[#allocation2 + $0x380] sm:$0xf]  ;;  %v4340_v43 = vld [vmem:[#allocation2 + $0x38c] sm:$0xf0]  ;;  %v3141_v46 = vor.u32 %v4308_v41, %v3140_v40  ;;  %1623 = vmatpush.bf16.msra.mxu0 %v2885_v44 }
  0x16   :  { %v2868_v47 = vld [vmem:[#allocation2 + $0x60] sm:$0xf]  ;;  %v4240_v48 = vld [vmem:[#allocation2 + $0x6c] sm:$0xf0]  ;;  %v3269_v50 = vor.u32 %v4340_v43, %v3268_v42  ;;  %1636 = vmatpush.bf16.msra.mxu1 %v3013_v45 }
  0x17   :  { %v2996_v49 = vld [vmem:[#allocation2 + $0x160] sm:$0xf]  ;;  %v4272_v51 = vld [vmem:[#allocation2 + $0x16c] sm:$0xf0]  ;;  %v2869_v56 = vor.u32 %v4240_v48, %v2868_v47  ;;  %1649 = vmatpush.bf16.msra.mxu2 %v3141_v46 }
  0x18   :  { %v3124_v52 = vld [vmem:[#allocation2 + $0x260] sm:$0xf]  ;;  %v4304_v53 = vld [vmem:[#allocation2 + $0x26c] sm:$0xf0]  ;;  %v2997_v57 = vor.u32 %v4272_v51, %v2996_v49  ;;  %1662 = vmatpush.bf16.msra.mxu3 %v3269_v50 }
  0x19   :  { %v3252_v54 = vld [vmem:[#allocation2 + $0x360] sm:$0xf]  ;;  %v4336_v55 = vld [vmem:[#allocation2 + $0x36c] sm:$0xf0]  ;;  %v3125_v58 = vor.u32 %v4304_v53, %v3124_v52  ;;  %1624 = vmatpush.bf16.msra.mxu0 %v2869_v56 }
  0x1a   :  { %v2852_v59 = vld [vmem:[#allocation2 + $0x40] sm:$0xf]  ;;  %v4236_v60 = vld [vmem:[#allocation2 + $0x4c] sm:$0xf0]  ;;  %v3253_v62 = vor.u32 %v4336_v55, %v3252_v54  ;;  %1637 = vmatpush.bf16.msra.mxu1 %v2997_v57 }
  0x1b   :  { %v2980_v61 = vld [vmem:[#allocation2 + $0x140] sm:$0xf]  ;;  %v4268_v63 = vld [vmem:[#allocation2 + $0x14c] sm:$0xf0]  ;;  %v2853_v4 = vor.u32 %v4236_v60, %v2852_v59  ;;  %1650 = vmatpush.bf16.msra.mxu2 %v3125_v58 }
  0x1c   :  { %v3108_v0 = vld [vmem:[#allocation2 + $0x240] sm:$0xf]  ;;  %v4300_v1 = vld [vmem:[#allocation2 + $0x24c] sm:$0xf0]  ;;  %v2981_v5 = vor.u32 %v4268_v63, %v2980_v61  ;;  %1663 = vmatpush.bf16.msra.mxu3 %v3253_v62 }
  0x1d   :  { %v3236_v2 = vld [vmem:[#allocation2 + $0x340] sm:$0xf]  ;;  %v4332_v3 = vld [vmem:[#allocation2 + $0x34c] sm:$0xf0]  ;;  %v3109_v6 = vor.u32 %v4300_v1, %v3108_v0  ;;  %1625 = vmatpush.bf16.msra.mxu0 %v2853_v4 }
  0x1e   :  { %v2836_v7 = vld [vmem:[#allocation2 + $0x20] sm:$0xf]  ;;  %v4232_v8 = vld [vmem:[#allocation2 + $0x2c] sm:$0xf0]  ;;  %v3237_v10 = vor.u32 %v4332_v3, %v3236_v2  ;;  %1638 = vmatpush.bf16.msra.mxu1 %v2981_v5  ;;  %v43_v2 = vld [vmem:[%s5373_s0] sm:$0xff] }
  0x1f   :  { %v2964_v9 = vld [vmem:[#allocation2 + $0x120] sm:$0xf]  ;;  %v4264_v11 = vld [vmem:[#allocation2 + $0x12c] sm:$0xf0]  ;;  %v2837_v16 = vor.u32 %v4232_v8, %v2836_v7  ;;  %1651 = vmatpush.bf16.msra.mxu2 %v3109_v6  ;;  %47 = vst [vmem:[#allocation1] ss:$4 sm:$0xff] %v43_v2 }
  0x20   :  { %v3092_v12 = vld [vmem:[#allocation2 + $0x220] sm:$0xf]  ;;  %v4296_v13 = vld [vmem:[#allocation2 + $0x22c] sm:$0xf0]  ;;  %v2965_v19 = vor.u32 %v4264_v11, %v2964_v9  ;;  %1664 = vmatpush.bf16.msra.mxu3 %v3237_v10 }
  0x21   :  { %v3220_v14 = vld [vmem:[#allocation2 + $0x320] sm:$0xf]  ;;  %v4328_v15 = vld [vmem:[#allocation2 + $0x32c] sm:$0xf0]  ;;  %v3093_v20 = vor.u32 %v4296_v13, %v3092_v12  ;;  %1626 = vmatpush.bf16.msra.mxu0 %v2837_v16 }
  0x22   :  { %v2820_v17 = vld [vmem:[#allocation2] sm:$0xf]  ;;  %v4228_v18 = vld [vmem:[#allocation2 + $0xc] sm:$0xf0]  ;;  %v3221_v24 = vor.u32 %v4328_v15, %v3220_v14  ;;  %1639 = vmatpush.bf16.msra.mxu1 %v2965_v19 }
  0x23   :  { %v2948_v21 = vld [vmem:[#allocation2 + $0x100] sm:$0xf]  ;;  %v4260_v22 = vld [vmem:[#allocation2 + $0x10c] sm:$0xf0]  ;;  %v2821_v31 = vor.u32 %v4228_v18, %v2820_v17  ;;  %1652 = vmatpush.bf16.msra.mxu2 %v3093_v20 }
  0x24   :  { %v3076_v23 = vld [vmem:[#allocation2 + $0x200] sm:$0xf]  ;;  %v4292_v25 = vld [vmem:[#allocation2 + $0x20c] sm:$0xf0]  ;;  %v2949_v35 = vor.u32 %v4260_v22, %v2948_v21  ;;  %1665 = vmatpush.bf16.msra.mxu3 %v3221_v24 }
  0x25   :  { %v3204_v26 = vld [vmem:[#allocation2 + $0x300] sm:$0xf]  ;;  %v4324_v27 = vld [vmem:[#allocation2 + $0x30c] sm:$0xf0]  ;;  %v3077_v36 = vor.u32 %v4292_v25, %v3076_v23  ;;  %1627 = vmatpush.bf16.msra.mxu0 %v2821_v31 }
  0x26   :  { %v3444_v28 = vld [vmem:[#allocation2 + $0x4e0] sm:$0xf]  ;;  %v4384_v29 = vld [vmem:[#allocation2 + $0x4ec] sm:$0xf0]  ;;  %v3205_v39 = vor.u32 %v4324_v27, %v3204_v26  ;;  %1640 = vmatpush.bf16.msra.mxu1 %v2949_v35 }
  0x27   :  { %v3572_v30 = vld [vmem:[#allocation2 + $0x5e0] sm:$0xf]  ;;  %v4416_v32 = vld [vmem:[#allocation2 + $0x5ec] sm:$0xf0]  ;;  %v3445_v40 = vor.u32 %v4384_v29, %v3444_v28  ;;  %1653 = vmatpush.bf16.msra.mxu2 %v3077_v36 }
  0x28   :  { %v3700_v33 = vld [vmem:[#allocation2 + $0x6e0] sm:$0xf]  ;;  %v4448_v34 = vld [vmem:[#allocation2 + $0x6ec] sm:$0xf0]  ;;  %v3573_v41 = vor.u32 %v4416_v32, %v3572_v30  ;;  %1666 = vmatpush.bf16.msra.mxu3 %v3205_v39 }
  0x29   :  { %v3828_v37 = vld [vmem:[#allocation2 + $0x7e0] sm:$0xf]  ;;  %v4480_v38 = vld [vmem:[#allocation2 + $0x7ec] sm:$0xf0]  ;;  %v3701_v42 = vor.u32 %v4448_v34, %v3700_v33  ;;  %1672 = vmatpush.bf16.msrb.mxu0 %v3445_v40 }
  0x2a   :  { %v3428_v43 = vld [vmem:[#allocation2 + $0x4c0] sm:$0xf]  ;;  %v4380_v44 = vld [vmem:[#allocation2 + $0x4cc] sm:$0xf0]  ;;  %v3829_v46 = vor.u32 %v4480_v38, %v3828_v37  ;;  %1685 = vmatpush.bf16.msrb.mxu1 %v3573_v41 }
  0x2b   :  { %v3556_v45 = vld [vmem:[#allocation2 + $0x5c0] sm:$0xf]  ;;  %v4412_v47 = vld [vmem:[#allocation2 + $0x5cc] sm:$0xf0]  ;;  %v3429_v52 = vor.u32 %v4380_v44, %v3428_v43  ;;  %1698 = vmatpush.bf16.msrb.mxu2 %v3701_v42 }
  0x2c   :  { %v3684_v48 = vld [vmem:[#allocation2 + $0x6c0] sm:$0xf]  ;;  %v4444_v49 = vld [vmem:[#allocation2 + $0x6cc] sm:$0xf0]  ;;  %v3557_v53 = vor.u32 %v4412_v47, %v3556_v45  ;;  %1711 = vmatpush.bf16.msrb.mxu3 %v3829_v46 }
  0x2d   :  { %v3812_v50 = vld [vmem:[#allocation2 + $0x7c0] sm:$0xf]  ;;  %v4476_v51 = vld [vmem:[#allocation2 + $0x7cc] sm:$0xf0]  ;;  %v3685_v54 = vor.u32 %v4444_v49, %v3684_v48  ;;  %1673 = vmatpush.bf16.msrb.mxu0 %v3429_v52 }
  0x2e   :  { %v3412_v55 = vld [vmem:[#allocation2 + $0x4a0] sm:$0xf]  ;;  %v4376_v56 = vld [vmem:[#allocation2 + $0x4ac] sm:$0xf0]  ;;  %v3813_v58 = vor.u32 %v4476_v51, %v3812_v50  ;;  %1686 = vmatpush.bf16.msrb.mxu1 %v3557_v53 }
  0x2f   :  { %v3540_v57 = vld [vmem:[#allocation2 + $0x5a0] sm:$0xf]  ;;  %v4408_v59 = vld [vmem:[#allocation2 + $0x5ac] sm:$0xf0]  ;;  %v3413_v0 = vor.u32 %v4376_v56, %v3412_v55  ;;  %1699 = vmatpush.bf16.msrb.mxu2 %v3685_v54 }
  0x30   :  { %v3668_v60 = vld [vmem:[#allocation2 + $0x6a0] sm:$0xf]  ;;  %v4440_v61 = vld [vmem:[#allocation2 + $0x6ac] sm:$0xf0]  ;;  %v3541_v3 = vor.u32 %v4408_v59, %v3540_v57  ;;  %1712 = vmatpush.bf16.msrb.mxu3 %v3813_v58 }
  0x31   :  { %v3796_v62 = vld [vmem:[#allocation2 + $0x7a0] sm:$0xf]  ;;  %v4472_v63 = vld [vmem:[#allocation2 + $0x7ac] sm:$0xf0]  ;;  %v3669_v4 = vor.u32 %v4440_v61, %v3668_v60  ;;  %1674 = vmatpush.bf16.msrb.mxu0 %v3413_v0 }
  0x32   :  { %v3396_v1 = vld [vmem:[#allocation2 + $0x480] sm:$0xf]  ;;  %v4372_v5 = vld [vmem:[#allocation2 + $0x48c] sm:$0xf0]  ;;  %v3797_v7 = vor.u32 %v4472_v63, %v3796_v62  ;;  %1687 = vmatpush.bf16.msrb.mxu1 %v3541_v3 }
  0x33   :  { %v3524_v6 = vld [vmem:[#allocation2 + $0x580] sm:$0xf]  ;;  %v4404_v8 = vld [vmem:[#allocation2 + $0x58c] sm:$0xf0]  ;;  %v3397_v13 = vor.u32 %v4372_v5, %v3396_v1  ;;  %1700 = vmatpush.bf16.msrb.mxu2 %v3669_v4 }
  0x34   :  { %v3652_v9 = vld [vmem:[#allocation2 + $0x680] sm:$0xf]  ;;  %v4436_v10 = vld [vmem:[#allocation2 + $0x68c] sm:$0xf0]  ;;  %v3525_v15 = vor.u32 %v4404_v8, %v3524_v6  ;;  %1713 = vmatpush.bf16.msrb.mxu3 %v3797_v7  ;;  %v4254_v6 = vld [vmem:[#allocation2 + $0xe4] sm:$0xf] }
  0x35   :  { %v3780_v11 = vld [vmem:[#allocation2 + $0x780] sm:$0xf]  ;;  %v4468_v12 = vld [vmem:[#allocation2 + $0x78c] sm:$0xf0]  ;;  %v3653_v16 = vor.u32 %v4436_v10, %v3652_v9  ;;  %1675 = vmatpush.bf16.msrb.mxu0 %v3397_v13  ;;  %v2934_v7 = vld [vmem:[#allocation2 + $0xf0] sm:$0xf0] }
  0x36   :  { %v3380_v14 = vld [vmem:[#allocation2 + $0x460] sm:$0xf]  ;;  %v4368_v17 = vld [vmem:[#allocation2 + $0x46c] sm:$0xf0]  ;;  %v3781_v20 = vor.u32 %v4468_v12, %v3780_v11  ;;  %1688 = vmatpush.bf16.msrb.mxu1 %v3525_v15  ;;  %v4286_v8 = vld [vmem:[#allocation2 + $0x1e4] sm:$0xf] }
  0x37   :  { %v3508_v18 = vld [vmem:[#allocation2 + $0x560] sm:$0xf]  ;;  %v4400_v19 = vld [vmem:[#allocation2 + $0x56c] sm:$0xf0]  ;;  %v3381_v27 = vor.u32 %v4368_v17, %v3380_v14  ;;  %1701 = vmatpush.bf16.msrb.mxu2 %v3653_v16  ;;  %v3062_v9 = vld [vmem:[#allocation2 + $0x1f0] sm:$0xf0] }
  0x38   :  { %v3636_v21 = vld [vmem:[#allocation2 + $0x660] sm:$0xf]  ;;  %v4432_v22 = vld [vmem:[#allocation2 + $0x66c] sm:$0xf0]  ;;  %v3509_v28 = vor.u32 %v4400_v19, %v3508_v18  ;;  %1714 = vmatpush.bf16.msrb.mxu3 %v3781_v20  ;;  %v4318_v10 = vld [vmem:[#allocation2 + $0x2e4] sm:$0xf] }
  0x39   :  { %v3764_v23 = vld [vmem:[#allocation2 + $0x760] sm:$0xf]  ;;  %v4464_v24 = vld [vmem:[#allocation2 + $0x76c] sm:$0xf0]  ;;  %v3637_v32 = vor.u32 %v4432_v22, %v3636_v21  ;;  %1676 = vmatpush.bf16.msrb.mxu0 %v3381_v27  ;;  %v3190_v12 = vld [vmem:[#allocation2 + $0x2f0] sm:$0xf0]  ;;  %v2937_v21 = vor.u32 %v4254_v6, %v2934_v7 }
  0x3a   :  { %v3364_v25 = vld [vmem:[#allocation2 + $0x440] sm:$0xf]  ;;  %v4364_v26 = vld [vmem:[#allocation2 + $0x44c] sm:$0xf0]  ;;  %v3765_v37 = vor.u32 %v4464_v24, %v3764_v23  ;;  %1689 = vmatpush.bf16.msrb.mxu1 %v3509_v28  ;;  %v4350_v13 = vld [vmem:[#allocation2 + $0x3e4] sm:$0xf]  ;;  %v3065_v24 = vor.u32 %v4286_v8, %v3062_v9 }
  0x3b   :  { %v3492_v29 = vld [vmem:[#allocation2 + $0x540] sm:$0xf]  ;;  %v52_v30 = vld.sshfl [vmem:[#allocation1 + $0x10] sm:$0xff pattern:$0x73625140]  ;;  %v3365_v45 = vor.u32 %v4364_v26, %v3364_v25  ;;  %1702 = vmatpush.bf16.msrb.mxu2 %v3637_v32  ;;  %v3193_v25 = vor.u32 %v4318_v10, %v3190_v12 }
  0x3c   :  { %v50_v31 = vld.sshfl [vmem:[#allocation1] sm:$0xff pattern:$0x73625140]  ;;  %v4685_v33 = vpack.c.bf16 %v52_v30, %v52_v30  ;;  %v53_v35 = vld.sshfl [vmem:[#allocation1 + $0x18] sm:$0xff pattern:$0x73625140]  ;;  %1715 = vmatpush.bf16.msrb.mxu3 %v3765_v37 }
  0x3d   :  { %v4687_v34 = vpack.c.bf16 %v50_v31, %v50_v31  ;;  %v51_v36 = vld.sshfl [vmem:[#allocation1 + $0x8] sm:$0xff pattern:$0x73625140]  ;;  %v4396_v38 = vld [vmem:[#allocation2 + $0x54c] sm:$0xf0]  ;;  %v4689_v41 = vpack.c.bf16 %v53_v35, %v53_v35  ;;  %1677 = vmatpush.bf16.msrb.mxu0 %v3365_v45 }
  0x3e   :  { %v3620_v39 = vld [vmem:[#allocation2 + $0x640] sm:$0xf]  ;;  %v4428_v40 = vld [vmem:[#allocation2 + $0x64c] sm:$0xf0]  ;;  %v4691_v42 = vpack.c.bf16 %v51_v36, %v51_v36  ;;  %1654 = vmatmul.bf16.vlgmr.msra.gmra.mxu2 %v4685_v33  ;;  %v3493_v48 = vor.u32 %v4396_v38, %v3492_v29  ;;  %v3318_v14 = vld [vmem:[#allocation2 + $0x3f0] sm:$0xf0] }
  0x3f   :  { %v3748_v43 = vld [vmem:[#allocation2 + $0x740] sm:$0xf]  ;;  %v4460_v44 = vld [vmem:[#allocation2 + $0x74c] sm:$0xf0]  ;;  %1628 = vmatmul.bf16.vlgmr.msra.gmra.mxu0 %v4687_v34  ;;  %1667 = vmatmul.bf16.vlgmr.msra.gmra.mxu3 %v4689_v41  ;;  %v3621_v49 = vor.u32 %v4428_v40, %v3620_v39  ;;  %v4250_v17 = vld [vmem:[#allocation2 + $0xc4] sm:$0xf]  ;;  %v3321_v28 = vor.u32 %v4350_v13, %v3318_v14 }
  0x40   :  { %v3348_v46 = vld [vmem:[#allocation2 + $0x420] sm:$0xf]  ;;  %v4360_v47 = vld [vmem:[#allocation2 + $0x42c] sm:$0xf0]  ;;  %v3749_v53 = vor.u32 %v4460_v44, %v3748_v43  ;;  %1641 = vmatmul.bf16.vlgmr.msra.gmra.mxu1 %v4691_v42  ;;  %v2918_v18 = vld [vmem:[#allocation2 + $0xd0] sm:$0xf0] }
  0x41   :  { %v3476_v50 = vld [vmem:[#allocation2 + $0x520] sm:$0xf]  ;;  %v4392_v51 = vld [vmem:[#allocation2 + $0x52c] sm:$0xf0]  ;;  %v3349_v59 = vor.u32 %v4360_v47, %v3348_v46  ;;  %1690 = vmatpush.bf16.msrb.mxu1 %v3493_v48  ;;  %1703 = vmatpush.bf16.msrb.mxu2 %v3621_v49  ;;  %v4282_v26 = vld [vmem:[#allocation2 + $0x1c4] sm:$0xf]  ;;  %v2921_v39 = vor.u32 %v4250_v17, %v2918_v18 }
  0x42   :  { %v44_v52 = vld [vmem:[%s5373_s0 + $0x8] sm:$0xff]  ;;  %v4424_v55 = vld [vmem:[#allocation2 + $0x62c] sm:$0xf0]  ;;  %v3477_v63 = vor.u32 %v4392_v51, %v3476_v50  ;;  %1716 = vmatpush.bf16.msrb.mxu3 %v3749_v53  ;;  %v3046_v29 = vld [vmem:[#allocation2 + $0x1d0] sm:$0xf0] }
  0x43   :  { %v3604_v54 = vld [vmem:[#allocation2 + $0x620] sm:$0xf]  ;;  %49 = vst [vmem:[#allocation1 + $0x20] ss:$4 sm:$0xff] %v44_v52  ;;  %v4456_v57 = vld [vmem:[#allocation2 + $0x72c] sm:$0xf0]  ;;  %1678 = vmatpush.bf16.msrb.mxu0 %v3349_v59  ;;  %v3049_v43 = vor.u32 %v4282_v26, %v3046_v29 }
  0x44   :  { %v3732_v56 = vld [vmem:[#allocation2 + $0x720] sm:$0xf]  ;;  %v4356_v60 = vld [vmem:[#allocation2 + $0x40c] sm:$0xf0]  ;;  %v3605_v0 = vor.u32 %v4424_v55, %v3604_v54  ;;  %v4314_v30 = vld [vmem:[#allocation2 + $0x2c4] sm:$0xf] }
  0x45   :  { %v3332_v58 = vld [vmem:[#allocation2 + $0x400] sm:$0xf]  ;;  %v4388_v62 = vld [vmem:[#allocation2 + $0x50c] sm:$0xf0]  ;;  %v3733_v4 = vor.u32 %v4456_v57, %v3732_v56  ;;  %1691 = vmatpush.bf16.msrb.mxu1 %v3477_v63  ;;  %v3174_v31 = vld [vmem:[#allocation2 + $0x2d0] sm:$0xf0] }
  0x46   :  { %v3460_v61 = vld [vmem:[#allocation2 + $0x500] sm:$0xf]  ;;  %v4420_v2 = vld [vmem:[#allocation2 + $0x60c] sm:$0xf0]  ;;  %v3333_v11 = vor.u32 %v4356_v60, %v3332_v58  ;;  %1704 = vmatpush.bf16.msrb.mxu2 %v3605_v0  ;;  %v4346_v35 = vld [vmem:[#allocation2 + $0x3c4] sm:$0xf]  ;;  %v3177_v44 = vor.u32 %v4314_v30, %v3174_v31 }
  0x47   :  { %v3588_v1 = vld [vmem:[#allocation2 + $0x600] sm:$0xf]  ;;  %v4452_v5 = vld [vmem:[#allocation2 + $0x70c] sm:$0xf0]  ;;  %v3461_v15 = vor.u32 %v4388_v62, %v3460_v61  ;;  %1717 = vmatpush.bf16.msrb.mxu3 %v3733_v4  ;;  %v3302_v36 = vld [vmem:[#allocation2 + $0x3d0] sm:$0xf0] }
  0x48   :  { %v3716_v3 = vld [vmem:[#allocation2 + $0x700] sm:$0xf]  ;;  %v3589_v16 = vor.u32 %v4420_v2, %v3588_v1  ;;  %1679 = vmatpush.bf16.msrb.mxu0 %v3333_v11  ;;  %v4246_v45 = vld [vmem:[#allocation2 + $0xa4] sm:$0xf]  ;;  %v2902_v46 = vld [vmem:[#allocation2 + $0xb0] sm:$0xf0]  ;;  %v3305_v48 = vor.u32 %v4346_v35, %v3302_v36 }
  0x49   :  { %v3717_v20 = vor.u32 %v4452_v5, %v3716_v3  ;;  %1692 = vmatpush.bf16.msrb.mxu1 %v3461_v15  ;;  %v4278_v47 = vld [vmem:[#allocation2 + $0x1a4] sm:$0xf]  ;;  %v3030_v49 = vld [vmem:[#allocation2 + $0x1b0] sm:$0xf0]  ;;  %v2905_v54 = vor.u32 %v4246_v45, %v2902_v46 }
  0x4a   :  { %v56_v19 = vld.sshfl [vmem:[#allocation1 + $0x30] sm:$0xff pattern:$0x73625140]  ;;  %v54_v22 = vld.sshfl [vmem:[#allocation1 + $0x20] sm:$0xff pattern:$0x73625140]  ;;  %1705 = vmatpush.bf16.msrb.mxu2 %v3589_v16  ;;  %v3033_v55 = vor.u32 %v4278_v47, %v3030_v49 }
  0x4b   :  { %v57_v23 = vld.sshfl [vmem:[#allocation1 + $0x38] sm:$0xff pattern:$0x73625140]  ;;  %v55_v27 = vld.sshfl [vmem:[#allocation1 + $0x28] sm:$0xff pattern:$0x73625140]  ;;  %v4700_v32 = vpack.c.bf16 %v56_v19, %v56_v19  ;;  %v4702_v37 = vpack.c.bf16 %v54_v22, %v54_v22  ;;  %1718 = vmatpush.bf16.msrb.mxu3 %v3717_v20 }
  0x4c   :  { %v4704_v38 = vpack.c.bf16 %v57_v23, %v57_v23  ;;  %1724 = vmatpush.bf16.msra.mxu0 %v2937_v21  ;;  %v4706_v40 = vpack.c.bf16 %v55_v27, %v55_v27  ;;  %v4310_v50 = vld [vmem:[#allocation2 + $0x2a4] sm:$0xf]  ;;  %v3158_v51 = vld [vmem:[#allocation2 + $0x2b0] sm:$0xf0] }
  0x4d   :  { %1737 = vmatpush.bf16.msra.mxu1 %v3065_v24  ;;  %v4342_v52 = vld [vmem:[#allocation2 + $0x3a4] sm:$0xf]  ;;  %v3286_v53 = vld [vmem:[#allocation2 + $0x3b0] sm:$0xf0]  ;;  %v3161_v56 = vor.u32 %v4310_v50, %v3158_v51 }
  0x4e   :  { %1750 = vmatpush.bf16.msra.mxu2 %v3193_v25  ;;  %v4242_v57 = vld [vmem:[#allocation2 + $0x84] sm:$0xf]  ;;  %v2886_v58 = vld [vmem:[#allocation2 + $0x90] sm:$0xf0]  ;;  %v3289_v60 = vor.u32 %v4342_v52, %v3286_v53 }
  0x4f   :  { %1763 = vmatpush.bf16.msra.mxu3 %v3321_v28  ;;  %1706 = vmatmul.bf16.vlgmr.msrb.gmra.mxu2 %v4700_v32  ;;  %v4274_v59 = vld [vmem:[#allocation2 + $0x184] sm:$0xf]  ;;  %v3014_v61 = vld [vmem:[#allocation2 + $0x190] sm:$0xf0]  ;;  %v2889_v2 = vor.u32 %v4242_v57, %v2886_v58 }
  0x50   :  { %1680 = vmatmul.bf16.vlgmr.msrb.gmra.mxu0 %v4702_v37  ;;  %1719 = vmatmul.bf16.vlgmr.msrb.gmra.mxu3 %v4704_v38  ;;  %v4306_v62 = vld [vmem:[#allocation2 + $0x284] sm:$0xf]  ;;  %v3142_v63 = vld [vmem:[#allocation2 + $0x290] sm:$0xf0]  ;;  %v3017_v3 = vor.u32 %v4274_v59, %v3014_v61 }
  0x51   :  { %1725 = vmatpush.bf16.msra.mxu0 %v2921_v39  ;;  %1693 = vmatmul.bf16.vlgmr.msrb.gmra.mxu1 %v4706_v40  ;;  %v4338_v0 = vld [vmem:[#allocation2 + $0x384] sm:$0xf]  ;;  %v3270_v1 = vld [vmem:[#allocation2 + $0x390] sm:$0xf0]  ;;  %v3145_v4 = vor.u32 %v4306_v62, %v3142_v63 }
  0x52   :  { %1738 = vmatpush.bf16.msra.mxu1 %v3049_v43  ;;  %1751 = vmatpush.bf16.msra.mxu2 %v3177_v44  ;;  %v4238_v5 = vld [vmem:[#allocation2 + $0x64] sm:$0xf]  ;;  %v2870_v6 = vld [vmem:[#allocation2 + $0x70] sm:$0xf0]  ;;  %v3273_v8 = vor.u32 %v4338_v0, %v3270_v1 }
  0x53   :  { %1764 = vmatpush.bf16.msra.mxu3 %v3305_v48  ;;  %v4270_v7 = vld [vmem:[#allocation2 + $0x164] sm:$0xf]  ;;  %v2998_v9 = vld [vmem:[#allocation2 + $0x170] sm:$0xf0]  ;;  %v2873_v14 = vor.u32 %v4238_v5, %v2870_v6 }
  0x54   :  { %v4302_v10 = vld [vmem:[#allocation2 + $0x264] sm:$0xf]  ;;  %v3126_v11 = vld [vmem:[#allocation2 + $0x270] sm:$0xf0]  ;;  %v3001_v15 = vor.u32 %v4270_v7, %v2998_v9 }
  0x55   :  { %1726 = vmatpush.bf16.msra.mxu0 %v2905_v54  ;;  %v4334_v12 = vld [vmem:[#allocation2 + $0x364] sm:$0xf]  ;;  %v3254_v13 = vld [vmem:[#allocation2 + $0x370] sm:$0xf0]  ;;  %v3129_v16 = vor.u32 %v4302_v10, %v3126_v11 }
  0x56   :  { %1739 = vmatpush.bf16.msra.mxu1 %v3033_v55  ;;  %1752 = vmatpush.bf16.msra.mxu2 %v3161_v56  ;;  %v4234_v17 = vld [vmem:[#allocation2 + $0x44] sm:$0xf]  ;;  %v2854_v18 = vld [vmem:[#allocation2 + $0x50] sm:$0xf0]  ;;  %v3257_v20 = vor.u32 %v4334_v12, %v3254_v13 }
  0x57   :  { %1765 = vmatpush.bf16.msra.mxu3 %v3289_v60  ;;  %v4266_v19 = vld [vmem:[#allocation2 + $0x144] sm:$0xf]  ;;  %v2982_v21 = vld [vmem:[#allocation2 + $0x150] sm:$0xf0]  ;;  %v2857_v26 = vor.u32 %v4234_v17, %v2854_v18 }
  0x58   :  { %v4298_v22 = vld [vmem:[#allocation2 + $0x244] sm:$0xf]  ;;  %v3110_v23 = vld [vmem:[#allocation2 + $0x250] sm:$0xf0]  ;;  %v2985_v27 = vor.u32 %v4266_v19, %v2982_v21 }
  0x59   :  { %1727 = vmatpush.bf16.msra.mxu0 %v2889_v2  ;;  %v4330_v24 = vld [vmem:[#allocation2 + $0x344] sm:$0xf]  ;;  %v3238_v25 = vld [vmem:[#allocation2 + $0x350] sm:$0xf0]  ;;  %v3113_v28 = vor.u32 %v4298_v22, %v3110_v23 }
  0x5a   :  { %1740 = vmatpush.bf16.msra.mxu1 %v3017_v3  ;;  %1753 = vmatpush.bf16.msra.mxu2 %v3145_v4  ;;  %v4230_v29 = vld [vmem:[#allocation2 + $0x24] sm:$0xf]  ;;  %v2838_v30 = vld [vmem:[#allocation2 + $0x30] sm:$0xf0]  ;;  %v3241_v35 = vor.u32 %v4330_v24, %v3238_v25 }
  0x5b   :  { %1766 = vmatpush.bf16.msra.mxu3 %v3273_v8  ;;  %v4262_v31 = vld [vmem:[#allocation2 + $0x124] sm:$0xf]  ;;  %v2966_v36 = vld [vmem:[#allocation2 + $0x130] sm:$0xf0]  ;;  %v2841_v46 = vor.u32 %v4230_v29, %v2838_v30 }
  0x5c   :  { %v4294_v39 = vld [vmem:[#allocation2 + $0x224] sm:$0xf]  ;;  %v3094_v43 = vld [vmem:[#allocation2 + $0x230] sm:$0xf0]  ;;  %v2969_v49 = vor.u32 %v4262_v31, %v2966_v36 }
  0x5d   :  { %1728 = vmatpush.bf16.msra.mxu0 %v2873_v14  ;;  %v4326_v44 = vld [vmem:[#allocation2 + $0x324] sm:$0xf]  ;;  %v3222_v45 = vld [vmem:[#allocation2 + $0x330] sm:$0xf0]  ;;  %v3097_v50 = vor.u32 %v4294_v39, %v3094_v43 }
  0x5e   :  { %1741 = vmatpush.bf16.msra.mxu1 %v3001_v15  ;;  %1754 = vmatpush.bf16.msra.mxu2 %v3129_v16  ;;  %v4226_v47 = vld [vmem:[#allocation2 + $0x4] sm:$0xf]  ;;  %v2822_v48 = vld [vmem:[#allocation2 + $0x10] sm:$0xf0]  ;;  %v3225_v54 = vor.u32 %v4326_v44, %v3222_v45 }
  0x5f   :  { %1767 = vmatpush.bf16.msra.mxu3 %v3257_v20  ;;  %v4258_v51 = vld [vmem:[#allocation2 + $0x104] sm:$0xf]  ;;  %v2950_v52 = vld [vmem:[#allocation2 + $0x110] sm:$0xf0]  ;;  %v2825_v61 = vor.u32 %v4226_v47, %v2822_v48 }
  0x60   :  { %v4290_v53 = vld [vmem:[#allocation2 + $0x204] sm:$0xf]  ;;  %v3078_v55 = vld [vmem:[#allocation2 + $0x210] sm:$0xf0]  ;;  %v2953_v1 = vor.u32 %v4258_v51, %v2950_v52 }
  0x61   :  { %1729 = vmatpush.bf16.msra.mxu0 %v2857_v26  ;;  %v4322_v56 = vld [vmem:[#allocation2 + $0x304] sm:$0xf]  ;;  %v3206_v57 = vld [vmem:[#allocation2 + $0x310] sm:$0xf0]  ;;  %v3081_v2 = vor.u32 %v4290_v53, %v3078_v55 }
  0x62   :  { %1742 = vmatpush.bf16.msra.mxu1 %v2985_v27  ;;  %1755 = vmatpush.bf16.msra.mxu2 %v3113_v28  ;;  %v4382_v58 = vld [vmem:[#allocation2 + $0x4e4] sm:$0xf]  ;;  %v3446_v59 = vld [vmem:[#allocation2 + $0x4f0] sm:$0xf0]  ;;  %v3209_v5 = vor.u32 %v4322_v56, %v3206_v57 }
  0x63   :  { %1768 = vmatpush.bf16.msra.mxu3 %v3241_v35  ;;  %v4414_v60 = vld [vmem:[#allocation2 + $0x5e4] sm:$0xf]  ;;  %v3574_v62 = vld [vmem:[#allocation2 + $0x5f0] sm:$0xf0]  ;;  %v3449_v6 = vor.u32 %v4382_v58, %v3446_v59 }
  0x64   :  { %v4446_v63 = vld [vmem:[#allocation2 + $0x6e4] sm:$0xf]  ;;  %v3702_v0 = vld [vmem:[#allocation2 + $0x6f0] sm:$0xf0]  ;;  %v3577_v7 = vor.u32 %v4414_v60, %v3574_v62 }
  0x65   :  { %1730 = vmatpush.bf16.msra.mxu0 %v2841_v46  ;;  %v4478_v3 = vld [vmem:[#allocation2 + $0x7e4] sm:$0xf]  ;;  %v3830_v4 = vld [vmem:[#allocation2 + $0x7f0] sm:$0xf0]  ;;  %v3705_v8 = vor.u32 %v4446_v63, %v3702_v0 }
  0x66   :  { %1743 = vmatpush.bf16.msra.mxu1 %v2969_v49  ;;  %1756 = vmatpush.bf16.msra.mxu2 %v3097_v50  ;;  %v4378_v9 = vld [vmem:[#allocation2 + $0x4c4] sm:$0xf]  ;;  %v3430_v10 = vld [vmem:[#allocation2 + $0x4d0] sm:$0xf0]  ;;  %v3833_v12 = vor.u32 %v4478_v3, %v3830_v4 }
  0x67   :  { %1769 = vmatpush.bf16.msra.mxu3 %v3225_v54  ;;  %v4410_v11 = vld [vmem:[#allocation2 + $0x5c4] sm:$0xf]  ;;  %v3558_v13 = vld [vmem:[#allocation2 + $0x5d0] sm:$0xf0]  ;;  %v3433_v18 = vor.u32 %v4378_v9, %v3430_v10 }
  0x68   :  { %v4442_v14 = vld [vmem:[#allocation2 + $0x6c4] sm:$0xf]  ;;  %v3686_v15 = vld [vmem:[#allocation2 + $0x6d0] sm:$0xf0]  ;;  %v3561_v19 = vor.u32 %v4410_v11, %v3558_v13 }
  0x69   :  { %1731 = vmatpush.bf16.msra.mxu0 %v2825_v61  ;;  %v4474_v16 = vld [vmem:[#allocation2 + $0x7c4] sm:$0xf]  ;;  %v3814_v17 = vld [vmem:[#allocation2 + $0x7d0] sm:$0xf0]  ;;  %v3689_v20 = vor.u32 %v4442_v14, %v3686_v15 }
  0x6a   :  { %1744 = vmatpush.bf16.msra.mxu1 %v2953_v1  ;;  %1757 = vmatpush.bf16.msra.mxu2 %v3081_v2  ;;  %v4374_v21 = vld [vmem:[#allocation2 + $0x4a4] sm:$0xf]  ;;  %v3414_v22 = vld [vmem:[#allocation2 + $0x4b0] sm:$0xf0]  ;;  %v3817_v24 = vor.u32 %v4474_v16, %v3814_v17 }
  0x6b   :  { %1770 = vmatpush.bf16.msra.mxu3 %v3209_v5  ;;  %v4406_v23 = vld [vmem:[#allocation2 + $0x5a4] sm:$0xf]  ;;  %v3542_v25 = vld [vmem:[#allocation2 + $0x5b0] sm:$0xf0]  ;;  %v3417_v30 = vor.u32 %v4374_v21, %v3414_v22 }
  0x6c   :  { %v4438_v26 = vld [vmem:[#allocation2 + $0x6a4] sm:$0xf]  ;;  %v3670_v27 = vld [vmem:[#allocation2 + $0x6b0] sm:$0xf0]  ;;  %1732 = vmatmul.bf16.vlgmr.msra.gmra.mxu0 %v4687_v34  ;;  %v3545_v31 = vor.u32 %v4406_v23, %v3542_v25 }
  0x6d   :  { %1776 = vmatpush.bf16.msrb.mxu0 %v3449_v6  ;;  %1758 = vmatmul.bf16.vlgmr.msra.gmra.mxu2 %v4685_v33  ;;  %v4470_v28 = vld [vmem:[#allocation2 + $0x7a4] sm:$0xf]  ;;  %v3798_v29 = vld [vmem:[#allocation2 + $0x7b0] sm:$0xf0]  ;;  %v3673_v35 = vor.u32 %v4438_v26, %v3670_v27 }
  0x6e   :  { %1789 = vmatpush.bf16.msrb.mxu1 %v3577_v7  ;;  %1802 = vmatpush.bf16.msrb.mxu2 %v3705_v8  ;;  %v4370_v36 = vld [vmem:[#allocation2 + $0x484] sm:$0xf]  ;;  %v3398_v39 = vld [vmem:[#allocation2 + $0x490] sm:$0xf0]  ;;  %v3801_v44 = vor.u32 %v4470_v28, %v3798_v29 }
  0x6f   :  { %1815 = vmatpush.bf16.msrb.mxu3 %v3833_v12  ;;  %1745 = vmatmul.bf16.vlgmr.msra.gmra.mxu1 %v4691_v42  ;;  %v4402_v43 = vld [vmem:[#allocation2 + $0x584] sm:$0xf]  ;;  %v3526_v45 = vld [vmem:[#allocation2 + $0x590] sm:$0xf0]  ;;  %v3401_v50 = vor.u32 %v4370_v36, %v3398_v39  ;;  %v2940_v39 = vld [vmem:[#allocation2 + $0xe8] sm:$0xf] }
  0x70   :  { %1771 = vmatmul.bf16.vlgmr.msra.gmra.mxu3 %v4689_v41  ;;  %v4434_v46 = vld [vmem:[#allocation2 + $0x684] sm:$0xf]  ;;  %v3654_v47 = vld [vmem:[#allocation2 + $0x690] sm:$0xf0]  ;;  %v3529_v51 = vor.u32 %v4402_v43, %v3526_v45  ;;  %v4257_v43 = vld [vmem:[#allocation2 + $0xf4] sm:$0xf0] }
  0x71   :  { %1777 = vmatpush.bf16.msrb.mxu0 %v3433_v18  ;;  %v4466_v48 = vld [vmem:[#allocation2 + $0x784] sm:$0xf]  ;;  %v3782_v49 = vld [vmem:[#allocation2 + $0x790] sm:$0xf0]  ;;  %v3657_v52 = vor.u32 %v4434_v46, %v3654_v47  ;;  %v4289_v46 = vld [vmem:[#allocation2 + $0x1f4] sm:$0xf0] }
  0x72   :  { %1790 = vmatpush.bf16.msrb.mxu1 %v3561_v19  ;;  %1803 = vmatpush.bf16.msrb.mxu2 %v3689_v20  ;;  %v4366_v53 = vld [vmem:[#allocation2 + $0x464] sm:$0xf]  ;;  %v3382_v54 = vld [vmem:[#allocation2 + $0x470] sm:$0xf0]  ;;  %v3785_v56 = vor.u32 %v4466_v48, %v3782_v49  ;;  %v3196_v47 = vld [vmem:[#allocation2 + $0x2e8] sm:$0xf] }
  0x73   :  { %1816 = vmatpush.bf16.msrb.mxu3 %v3817_v24  ;;  %v4398_v55 = vld [vmem:[#allocation2 + $0x564] sm:$0xf]  ;;  %v3510_v57 = vld [vmem:[#allocation2 + $0x570] sm:$0xf0]  ;;  %v3385_v62 = vor.u32 %v4366_v53, %v3382_v54  ;;  %v4321_v48 = vld [vmem:[#allocation2 + $0x2f4] sm:$0xf0]  ;;  %v2941_v54 = vor.u32 %v4257_v43, %v2940_v39 }
  0x74   :  { %v4430_v58 = vld [vmem:[#allocation2 + $0x664] sm:$0xf]  ;;  %v3638_v59 = vld [vmem:[#allocation2 + $0x670] sm:$0xf0]  ;;  %v3513_v63 = vor.u32 %v4398_v55, %v3510_v57  ;;  %v2924_v57 = vld [vmem:[#allocation2 + $0xc8] sm:$0xf] }
  0x75   :  { %1778 = vmatpush.bf16.msrb.mxu0 %v3417_v30  ;;  %v4462_v60 = vld [vmem:[#allocation2 + $0x764] sm:$0xf]  ;;  %v3766_v61 = vld [vmem:[#allocation2 + $0x770] sm:$0xf0]  ;;  %v3641_v0 = vor.u32 %v4430_v58, %v3638_v59  ;;  %v4253_v58 = vld [vmem:[#allocation2 + $0xd4] sm:$0xf0] }
  0x76   :  { %1791 = vmatpush.bf16.msrb.mxu1 %v3545_v31  ;;  %1804 = vmatpush.bf16.msrb.mxu2 %v3673_v35  ;;  %v4362_v1 = vld [vmem:[#allocation2 + $0x444] sm:$0xf]  ;;  %v3366_v2 = vld [vmem:[#allocation2 + $0x450] sm:$0xf0]  ;;  %v3769_v4 = vor.u32 %v4462_v60, %v3766_v61  ;;  %v3052_v59 = vld [vmem:[#allocation2 + $0x1c8] sm:$0xf] }
  0x77   :  { %1817 = vmatpush.bf16.msrb.mxu3 %v3801_v44  ;;  %v4394_v3 = vld [vmem:[#allocation2 + $0x544] sm:$0xf]  ;;  %v3494_v5 = vld [vmem:[#allocation2 + $0x550] sm:$0xf0]  ;;  %v3369_v10 = vor.u32 %v4362_v1, %v3366_v2  ;;  %v3068_v44 = vld [vmem:[#allocation2 + $0x1e8] sm:$0xf]  ;;  %v2925_v2 = vor.u32 %v4253_v58, %v2924_v57 }
  0x78   :  { %v4426_v6 = vld [vmem:[#allocation2 + $0x644] sm:$0xf]  ;;  %v3622_v7 = vld [vmem:[#allocation2 + $0x650] sm:$0xf0]  ;;  %v3497_v11 = vor.u32 %v4394_v3, %v3494_v5  ;;  %v3069_v55 = vor.u32 %v4289_v46, %v3068_v44  ;;  %v4285_v61 = vld [vmem:[#allocation2 + $0x1d4] sm:$0xf0] }
  0x79   :  { %1779 = vmatpush.bf16.msrb.mxu0 %v3401_v50  ;;  %v4458_v8 = vld [vmem:[#allocation2 + $0x744] sm:$0xf]  ;;  %v3750_v9 = vld [vmem:[#allocation2 + $0x750] sm:$0xf0]  ;;  %v3625_v12 = vor.u32 %v4426_v6, %v3622_v7  ;;  %v4349_v1 = vld [vmem:[#allocation2 + $0x3d4] sm:$0xf0]  ;;  %v3053_v3 = vor.u32 %v4285_v61, %v3052_v59 }
  0x7a   :  { %1792 = vmatpush.bf16.msrb.mxu1 %v3529_v51  ;;  %1805 = vmatpush.bf16.msrb.mxu2 %v3657_v52  ;;  %v4358_v13 = vld [vmem:[#allocation2 + $0x424] sm:$0xf]  ;;  %v3350_v14 = vld [vmem:[#allocation2 + $0x430] sm:$0xf0]  ;;  %v3753_v16 = vor.u32 %v4458_v8, %v3750_v9  ;;  %v3324_v51 = vld [vmem:[#allocation2 + $0x3e8] sm:$0xf] }
  0x7b   :  { %1818 = vmatpush.bf16.msrb.mxu3 %v3785_v56  ;;  %v4390_v15 = vld [vmem:[#allocation2 + $0x524] sm:$0xf]  ;;  %v3478_v17 = vld [vmem:[#allocation2 + $0x530] sm:$0xf0]  ;;  %v3353_v22 = vor.u32 %v4358_v13, %v3350_v14  ;;  %v4353_v52 = vld [vmem:[#allocation2 + $0x3f4] sm:$0xf0]  ;;  %v3197_v56 = vor.u32 %v4321_v48, %v3196_v47 }
  0x7c   :  { %v4422_v18 = vld [vmem:[#allocation2 + $0x624] sm:$0xf]  ;;  %v3606_v19 = vld [vmem:[#allocation2 + $0x630] sm:$0xf0]  ;;  %v3481_v25 = vor.u32 %v4390_v15, %v3478_v17  ;;  %v3325_v60 = vor.u32 %v4353_v52, %v3324_v51  ;;  %v2908_v5 = vld [vmem:[#allocation2 + $0xa8] sm:$0xf] }
  0x7d   :  { %1780 = vmatpush.bf16.msrb.mxu0 %v3385_v62  ;;  %v4454_v20 = vld [vmem:[#allocation2 + $0x724] sm:$0xf]  ;;  %v3734_v21 = vld [vmem:[#allocation2 + $0x730] sm:$0xf0]  ;;  %v3609_v26 = vor.u32 %v4422_v18, %v3606_v19  ;;  %v3180_v62 = vld [vmem:[#allocation2 + $0x2c8] sm:$0xf] }
  0x7e   :  { %1793 = vmatpush.bf16.msrb.mxu1 %v3513_v63  ;;  %1806 = vmatpush.bf16.msrb.mxu2 %v3641_v0  ;;  %v4354_v23 = vld [vmem:[#allocation2 + $0x404] sm:$0xf]  ;;  %v3334_v24 = vld [vmem:[#allocation2 + $0x410] sm:$0xf0]  ;;  %v3737_v30 = vor.u32 %v4454_v20, %v3734_v21  ;;  %v4317_v63 = vld [vmem:[#allocation2 + $0x2d4] sm:$0xf0] }
  0x7f   :  { %1819 = vmatpush.bf16.msrb.mxu3 %v3769_v4  ;;  %v4386_v27 = vld [vmem:[#allocation2 + $0x504] sm:$0xf]  ;;  %v3462_v28 = vld [vmem:[#allocation2 + $0x510] sm:$0xf0]  ;;  %v3337_v45 = vor.u32 %v4354_v23, %v3334_v24  ;;  %v3308_v0 = vld [vmem:[#allocation2 + $0x3c8] sm:$0xf]  ;;  %v3181_v4 = vor.u32 %v4317_v63, %v3180_v62 }
  0x80   :  { %v4418_v29 = vld [vmem:[#allocation2 + $0x604] sm:$0xf]  ;;  %v3590_v31 = vld [vmem:[#allocation2 + $0x610] sm:$0xf0]  ;;  %v3465_v49 = vor.u32 %v4386_v27, %v3462_v28  ;;  %v4249_v6 = vld [vmem:[#allocation2 + $0xb4] sm:$0xf0]  ;;  %v3309_v8 = vor.u32 %v4349_v1, %v3308_v0 }
  0x81   :  { %1781 = vmatpush.bf16.msrb.mxu0 %v3369_v10  ;;  %v4450_v35 = vld [vmem:[#allocation2 + $0x704] sm:$0xf]  ;;  %v3718_v36 = vld [vmem:[#allocation2 + $0x710] sm:$0xf0]  ;;  %v3593_v50 = vor.u32 %v4418_v29, %v3590_v31  ;;  %v3036_v7 = vld [vmem:[#allocation2 + $0x1a8] sm:$0xf]  ;;  %v2909_v14 = vor.u32 %v4249_v6, %v2908_v5 }
  0x82   :  { %1794 = vmatpush.bf16.msrb.mxu1 %v3497_v11  ;;  %1807 = vmatpush.bf16.msrb.mxu2 %v3625_v12  ;;  %v3721_v53 = vor.u32 %v4450_v35, %v3718_v36  ;;  %v4281_v9 = vld [vmem:[#allocation2 + $0x1b4] sm:$0xf0]  ;;  %v3164_v10 = vld [vmem:[#allocation2 + $0x2a8] sm:$0xf] }
  0x83   :  { %1820 = vmatpush.bf16.msrb.mxu3 %v3753_v16  ;;  %v4313_v11 = vld [vmem:[#allocation2 + $0x2b4] sm:$0xf0]  ;;  %v3292_v12 = vld [vmem:[#allocation2 + $0x3a8] sm:$0xf]  ;;  %v3037_v15 = vor.u32 %v4281_v9, %v3036_v7 }
  0x84   :  { %v4345_v13 = vld [vmem:[#allocation2 + $0x3b4] sm:$0xf0]  ;;  %v3165_v16 = vor.u32 %v4313_v11, %v3164_v10  ;;  %v2892_v17 = vld [vmem:[#allocation2 + $0x88] sm:$0xf] }
  0x85   :  { %1782 = vmatpush.bf16.msrb.mxu0 %v3353_v22  ;;  %v4245_v18 = vld [vmem:[#allocation2 + $0x94] sm:$0xf0]  ;;  %v3020_v19 = vld [vmem:[#allocation2 + $0x188] sm:$0xf]  ;;  %v3293_v20 = vor.u32 %v4345_v13, %v3292_v12 }
  0x86   :  { %1795 = vmatpush.bf16.msrb.mxu1 %v3481_v25  ;;  %1808 = vmatpush.bf16.msrb.mxu2 %v3609_v26  ;;  %v4277_v21 = vld [vmem:[#allocation2 + $0x194] sm:$0xf0]  ;;  %v3148_v22 = vld [vmem:[#allocation2 + $0x288] sm:$0xf]  ;;  %v2893_v26 = vor.u32 %v4245_v18, %v2892_v17 }
  0x87   :  { %1821 = vmatpush.bf16.msrb.mxu3 %v3737_v30  ;;  %v4309_v23 = vld [vmem:[#allocation2 + $0x294] sm:$0xf0]  ;;  %v3276_v24 = vld [vmem:[#allocation2 + $0x388] sm:$0xf]  ;;  %v3021_v27 = vor.u32 %v4277_v21, %v3020_v19 }
  0x88   :  { %v4341_v25 = vld [vmem:[#allocation2 + $0x394] sm:$0xf0]  ;;  %v3149_v28 = vor.u32 %v4309_v23, %v3148_v22  ;;  %v2876_v29 = vld [vmem:[#allocation2 + $0x68] sm:$0xf] }
  0x89   :  { %1783 = vmatpush.bf16.msrb.mxu0 %v3337_v45  ;;  %v4241_v30 = vld [vmem:[#allocation2 + $0x74] sm:$0xf0]  ;;  %v3004_v31 = vld [vmem:[#allocation2 + $0x168] sm:$0xf]  ;;  %v3277_v35 = vor.u32 %v4341_v25, %v3276_v24 }
  0x8a   :  { %1796 = vmatpush.bf16.msrb.mxu1 %v3465_v49  ;;  %1809 = vmatpush.bf16.msrb.mxu2 %v3593_v50  ;;  %v4273_v36 = vld [vmem:[#allocation2 + $0x174] sm:$0xf0]  ;;  %v3132_v39 = vld [vmem:[#allocation2 + $0x268] sm:$0xf]  ;;  %v2877_v46 = vor.u32 %v4241_v30, %v2876_v29 }
  0x8b   :  { %1822 = vmatpush.bf16.msrb.mxu3 %v3721_v53  ;;  %v4305_v43 = vld [vmem:[#allocation2 + $0x274] sm:$0xf0]  ;;  %v3260_v44 = vld [vmem:[#allocation2 + $0x368] sm:$0xf]  ;;  %v3005_v47 = vor.u32 %v4273_v36, %v3004_v31 }
  0x8c   :  { %1784 = vmatmul.bf16.vlgmr.msrb.gmra.mxu0 %v4702_v37  ;;  %v4337_v45 = vld [vmem:[#allocation2 + $0x374] sm:$0xf0]  ;;  %v3133_v48 = vor.u32 %v4305_v43, %v3132_v39  ;;  %v2860_v49 = vld [vmem:[#allocation2 + $0x48] sm:$0xf] }
  0x8d   :  { %1828 = vmatpush.bf16.msra.mxu0 %v2941_v54  ;;  %1810 = vmatmul.bf16.vlgmr.msrb.gmra.mxu2 %v4700_v32  ;;  %v4237_v50 = vld [vmem:[#allocation2 + $0x54] sm:$0xf0]  ;;  %v2988_v51 = vld [vmem:[#allocation2 + $0x148] sm:$0xf]  ;;  %v3261_v52 = vor.u32 %v4337_v45, %v3260_v44 }
  0x8e   :  { %1841 = vmatpush.bf16.msra.mxu1 %v3069_v55  ;;  %1854 = vmatpush.bf16.msra.mxu2 %v3197_v56  ;;  %v4269_v53 = vld [vmem:[#allocation2 + $0x154] sm:$0xf0]  ;;  %v3116_v54 = vld [vmem:[#allocation2 + $0x248] sm:$0xf]  ;;  %v2861_v58 = vor.u32 %v4237_v50, %v2860_v49 }
  0x8f   :  { %1867 = vmatpush.bf16.msra.mxu3 %v3325_v60  ;;  %1797 = vmatmul.bf16.vlgmr.msrb.gmra.mxu1 %v4706_v40  ;;  %v4301_v55 = vld [vmem:[#allocation2 + $0x254] sm:$0xf0]  ;;  %v3244_v56 = vld [vmem:[#allocation2 + $0x348] sm:$0xf]  ;;  %v2989_v59 = vor.u32 %v4269_v53, %v2988_v51 }
  0x90   :  { %1823 = vmatmul.bf16.vlgmr.msrb.gmra.mxu3 %v4704_v38  ;;  %v4333_v57 = vld [vmem:[#allocation2 + $0x354] sm:$0xf0]  ;;  %v3117_v60 = vor.u32 %v4301_v55, %v3116_v54  ;;  %v2844_v61 = vld [vmem:[#allocation2 + $0x28] sm:$0xf] }
  0x91   :  { %1829 = vmatpush.bf16.msra.mxu0 %v2925_v2  ;;  %v4233_v62 = vld [vmem:[#allocation2 + $0x34] sm:$0xf0]  ;;  %v2972_v63 = vld [vmem:[#allocation2 + $0x128] sm:$0xf]  ;;  %v3245_v0 = vor.u32 %v4333_v57, %v3244_v56 }
  0x92   :  { %1842 = vmatpush.bf16.msra.mxu1 %v3053_v3  ;;  %1855 = vmatpush.bf16.msra.mxu2 %v3181_v4  ;;  %v4265_v1 = vld [vmem:[#allocation2 + $0x134] sm:$0xf0]  ;;  %v3100_v2 = vld [vmem:[#allocation2 + $0x228] sm:$0xf]  ;;  %v2845_v6 = vor.u32 %v4233_v62, %v2844_v61 }
  0x93   :  { %1868 = vmatpush.bf16.msra.mxu3 %v3309_v8  ;;  %v4297_v3 = vld [vmem:[#allocation2 + $0x234] sm:$0xf0]  ;;  %v3228_v4 = vld [vmem:[#allocation2 + $0x328] sm:$0xf]  ;;  %v2973_v9 = vor.u32 %v4265_v1, %v2972_v63 }
  0x94   :  { %v4329_v5 = vld [vmem:[#allocation2 + $0x334] sm:$0xf0]  ;;  %v2828_v7 = vld [vmem:[#allocation2 + $0x8] sm:$0xf]  ;;  %v3101_v10 = vor.u32 %v4297_v3, %v3100_v2 }
  0x95   :  { %1830 = vmatpush.bf16.msra.mxu0 %v2909_v14  ;;  %v4229_v8 = vld [vmem:[#allocation2 + $0x14] sm:$0xf0]  ;;  %v2956_v11 = vld [vmem:[#allocation2 + $0x108] sm:$0xf]  ;;  %v3229_v14 = vor.u32 %v4329_v5, %v3228_v4 }
  0x96   :  { %1843 = vmatpush.bf16.msra.mxu1 %v3037_v15  ;;  %1856 = vmatpush.bf16.msra.mxu2 %v3165_v16  ;;  %v4261_v12 = vld [vmem:[#allocation2 + $0x114] sm:$0xf0]  ;;  %v3084_v13 = vld [vmem:[#allocation2 + $0x208] sm:$0xf]  ;;  %v2829_v21 = vor.u32 %v4229_v8, %v2828_v7 }
  0x97   :  { %1869 = vmatpush.bf16.msra.mxu3 %v3293_v20  ;;  %v4293_v15 = vld [vmem:[#allocation2 + $0x214] sm:$0xf0]  ;;  %v3212_v16 = vld [vmem:[#allocation2 + $0x308] sm:$0xf]  ;;  %v2957_v25 = vor.u32 %v4261_v12, %v2956_v11 }
  0x98   :  { %v4325_v17 = vld [vmem:[#allocation2 + $0x314] sm:$0xf0]  ;;  %v3452_v18 = vld [vmem:[#allocation2 + $0x4e8] sm:$0xf] }
  0x99   :  { %1831 = vmatpush.bf16.msra.mxu0 %v2893_v26  ;;  %v4385_v19 = vld [vmem:[#allocation2 + $0x4f4] sm:$0xf0]  ;;  %v3580_v20 = vld [vmem:[#allocation2 + $0x5e8] sm:$0xf]  ;;  %v3085_v26 = vor.u32 %v4293_v15, %v3084_v13  ;;  %v3213_v29 = vor.u32 %v4325_v17, %v3212_v16 }
  0x9a   :  { %1844 = vmatpush.bf16.msra.mxu1 %v3021_v27  ;;  %1857 = vmatpush.bf16.msra.mxu2 %v3149_v28  ;;  %v4417_v22 = vld [vmem:[#allocation2 + $0x5f4] sm:$0xf0]  ;;  %v3708_v23 = vld [vmem:[#allocation2 + $0x6e8] sm:$0xf]  ;;  %v3453_v30 = vor.u32 %v4385_v19, %v3452_v18 }
  0x9b   :  { %1870 = vmatpush.bf16.msra.mxu3 %v3277_v35  ;;  %v4449_v24 = vld [vmem:[#allocation2 + $0x6f4] sm:$0xf0]  ;;  %v3836_v27 = vld [vmem:[#allocation2 + $0x7e8] sm:$0xf]  ;;  %v3581_v31 = vor.u32 %v4417_v22, %v3580_v20 }
  0x9c   :  { %v4481_v28 = vld [vmem:[#allocation2 + $0x7f4] sm:$0xf0]  ;;  %v3709_v35 = vor.u32 %v4449_v24, %v3708_v23  ;;  %v3436_v36 = vld [vmem:[#allocation2 + $0x4c8] sm:$0xf] }
  0x9d   :  { %1832 = vmatpush.bf16.msra.mxu0 %v2877_v46  ;;  %v4381_v39 = vld [vmem:[#allocation2 + $0x4d4] sm:$0xf0]  ;;  %v3564_v43 = vld [vmem:[#allocation2 + $0x5c8] sm:$0xf]  ;;  %v3837_v44 = vor.u32 %v4481_v28, %v3836_v27 }
  0x9e   :  { %1845 = vmatpush.bf16.msra.mxu1 %v3005_v47  ;;  %1858 = vmatpush.bf16.msra.mxu2 %v3133_v48  ;;  %v4413_v45 = vld [vmem:[#allocation2 + $0x5d4] sm:$0xf0]  ;;  %v3692_v46 = vld [vmem:[#allocation2 + $0x6c8] sm:$0xf]  ;;  %v3437_v50 = vor.u32 %v4381_v39, %v3436_v36 }
  0x9f   :  { %1871 = vmatpush.bf16.msra.mxu3 %v3261_v52  ;;  %v4445_v47 = vld [vmem:[#allocation2 + $0x6d4] sm:$0xf0]  ;;  %v3820_v48 = vld [vmem:[#allocation2 + $0x7c8] sm:$0xf]  ;;  %v3565_v51 = vor.u32 %v4413_v45, %v3564_v43 }
  0xa0   :  { %v4477_v49 = vld [vmem:[#allocation2 + $0x7d4] sm:$0xf0]  ;;  %v3693_v52 = vor.u32 %v4445_v47, %v3692_v46  ;;  %v3420_v53 = vld [vmem:[#allocation2 + $0x4a8] sm:$0xf] }
  0xa1   :  { %1833 = vmatpush.bf16.msra.mxu0 %v2861_v58  ;;  %v4377_v54 = vld [vmem:[#allocation2 + $0x4b4] sm:$0xf0]  ;;  %v3548_v55 = vld [vmem:[#allocation2 + $0x5a8] sm:$0xf]  ;;  %v3821_v56 = vor.u32 %v4477_v49, %v3820_v48 }
  0xa2   :  { %1846 = vmatpush.bf16.msra.mxu1 %v2989_v59  ;;  %1859 = vmatpush.bf16.msra.mxu2 %v3117_v60  ;;  %v4409_v57 = vld [vmem:[#allocation2 + $0x5b4] sm:$0xf0]  ;;  %v3676_v58 = vld [vmem:[#allocation2 + $0x6a8] sm:$0xf]  ;;  %v3421_v62 = vor.u32 %v4377_v54, %v3420_v53 }
  0xa3   :  { %1872 = vmatpush.bf16.msra.mxu3 %v3245_v0  ;;  %v4441_v59 = vld [vmem:[#allocation2 + $0x6b4] sm:$0xf0]  ;;  %v3804_v60 = vld [vmem:[#allocation2 + $0x7a8] sm:$0xf]  ;;  %v3549_v63 = vor.u32 %v4409_v57, %v3548_v55 }
  0xa4   :  { %v4473_v61 = vld [vmem:[#allocation2 + $0x7b4] sm:$0xf0]  ;;  %v3677_v0 = vor.u32 %v4441_v59, %v3676_v58  ;;  %v3404_v1 = vld [vmem:[#allocation2 + $0x488] sm:$0xf] }
  0xa5   :  { %1834 = vmatpush.bf16.msra.mxu0 %v2845_v6  ;;  %v4373_v2 = vld [vmem:[#allocation2 + $0x494] sm:$0xf0]  ;;  %v3532_v3 = vld [vmem:[#allocation2 + $0x588] sm:$0xf]  ;;  %v3805_v4 = vor.u32 %v4473_v61, %v3804_v60 }
  0xa6   :  { %1847 = vmatpush.bf16.msra.mxu1 %v2973_v9  ;;  %1860 = vmatpush.bf16.msra.mxu2 %v3101_v10  ;;  %v4405_v5 = vld [vmem:[#allocation2 + $0x594] sm:$0xf0]  ;;  %v3660_v6 = vld [vmem:[#allocation2 + $0x688] sm:$0xf]  ;;  %v3405_v10 = vor.u32 %v4373_v2, %v3404_v1 }
  0xa7   :  { %1873 = vmatpush.bf16.msra.mxu3 %v3229_v14  ;;  %v4437_v7 = vld [vmem:[#allocation2 + $0x694] sm:$0xf0]  ;;  %v3788_v8 = vld [vmem:[#allocation2 + $0x788] sm:$0xf]  ;;  %v3533_v11 = vor.u32 %v4405_v5, %v3532_v3 }
  0xa8   :  { %v4469_v9 = vld [vmem:[#allocation2 + $0x794] sm:$0xf0]  ;;  %v3661_v12 = vor.u32 %v4437_v7, %v3660_v6  ;;  %v3388_v13 = vld [vmem:[#allocation2 + $0x468] sm:$0xf]  ;;  %v4255_v6 = vld [vmem:[#allocation2 + $0xec] sm:$0xf] }
  0xa9   :  { %1835 = vmatpush.bf16.msra.mxu0 %v2829_v21  ;;  %v4369_v14 = vld [vmem:[#allocation2 + $0x474] sm:$0xf0]  ;;  %v3516_v15 = vld [vmem:[#allocation2 + $0x568] sm:$0xf]  ;;  %v3789_v16 = vor.u32 %v4469_v9, %v3788_v8  ;;  %v2942_v7 = vld [vmem:[#allocation2 + $0xf8] sm:$0xf0] }
  0xaa   :  { %1848 = vmatpush.bf16.msra.mxu1 %v2957_v25  ;;  %1861 = vmatpush.bf16.msra.mxu2 %v3085_v26  ;;  %v4401_v17 = vld [vmem:[#allocation2 + $0x574] sm:$0xf0]  ;;  %v3644_v18 = vld [vmem:[#allocation2 + $0x668] sm:$0xf]  ;;  %v3389_v22 = vor.u32 %v4369_v14, %v3388_v13  ;;  %v4287_v8 = vld [vmem:[#allocation2 + $0x1ec] sm:$0xf] }
  0xab   :  { %1874 = vmatpush.bf16.msra.mxu3 %v3213_v29  ;;  %v4433_v19 = vld [vmem:[#allocation2 + $0x674] sm:$0xf0]  ;;  %v3772_v20 = vld [vmem:[#allocation2 + $0x768] sm:$0xf]  ;;  %v3517_v24 = vor.u32 %v4401_v17, %v3516_v15  ;;  %v3198_v13 = vld [vmem:[#allocation2 + $0x2f8] sm:$0xf0] }
  0xac   :  { %1836 = vmatmul.bf16.vlgmr.msra.gmra.mxu0 %v4687_v34  ;;  %v4465_v21 = vld [vmem:[#allocation2 + $0x774] sm:$0xf0]  ;;  %v3372_v23 = vld [vmem:[#allocation2 + $0x448] sm:$0xf]  ;;  %v3645_v25 = vor.u32 %v4433_v19, %v3644_v18  ;;  %v4351_v17 = vld [vmem:[#allocation2 + $0x3ec] sm:$0xf] }
  0xad   :  { %1880 = vmatpush.bf16.msrb.mxu0 %v3453_v30  ;;  %1862 = vmatmul.bf16.vlgmr.msra.gmra.mxu2 %v4685_v33  ;;  %v4365_v26 = vld [vmem:[#allocation2 + $0x454] sm:$0xf0]  ;;  %v3500_v27 = vld [vmem:[#allocation2 + $0x548] sm:$0xf]  ;;  %v3773_v29 = vor.u32 %v4465_v21, %v3772_v20  ;;  %v3326_v18 = vld [vmem:[#allocation2 + $0x3f8] sm:$0xf0]  ;;  %v2945_v20 = vor.u32 %v4255_v6, %v2942_v7 }
  0xae   :  { %1893 = vmatpush.bf16.msrb.mxu1 %v3581_v31  ;;  %1906 = vmatpush.bf16.msrb.mxu2 %v3709_v35  ;;  %v4397_v28 = vld [vmem:[#allocation2 + $0x554] sm:$0xf0]  ;;  %v3628_v30 = vld [vmem:[#allocation2 + $0x648] sm:$0xf]  ;;  %v3373_v43 = vor.u32 %v4365_v26, %v3372_v23  ;;  %v4283_v26 = vld [vmem:[#allocation2 + $0x1cc] sm:$0xf] }
  0xaf   :  { %1919 = vmatpush.bf16.msrb.mxu3 %v3837_v44  ;;  %1849 = vmatmul.bf16.vlgmr.msra.gmra.mxu1 %v4691_v42  ;;  %v4429_v31 = vld [vmem:[#allocation2 + $0x654] sm:$0xf0]  ;;  %v3756_v36 = vld [vmem:[#allocation2 + $0x748] sm:$0xf]  ;;  %v3501_v45 = vor.u32 %v4397_v28, %v3500_v27  ;;  %v3150_v6 = vld [vmem:[#allocation2 + $0x298] sm:$0xf0] }
  0xb0   :  { %1875 = vmatmul.bf16.vlgmr.msra.gmra.mxu3 %v4689_v41  ;;  %v4727_v35 = vld [vmem:[%s5375_s2] sm:$0xf]  ;;  %v3356_v44 = vld [vmem:[#allocation2 + $0x428] sm:$0xf]  ;;  %v3629_v46 = vor.u32 %v4429_v31, %v3628_v30  ;;  %v3054_v30 = vld [vmem:[#allocation2 + $0x1d8] sm:$0xf0] }
  0xb1   :  { %1881 = vmatpush.bf16.msrb.mxu0 %v3437_v50  ;;  %v4461_v39 = vld [vmem:[#allocation2 + $0x754] sm:$0xf0]  ;;  %v3484_v48 = vld [vmem:[#allocation2 + $0x528] sm:$0xf]  ;;  %v332_v49 = vperm.slane %v4727_v35, 0 }
  0xb2   :  { %1894 = vmatpush.bf16.msrb.mxu1 %v3565_v51  ;;  %1907 = vmatpush.bf16.msrb.mxu2 %v3693_v52  ;;  %v4361_v47 = vld [vmem:[#allocation2 + $0x434] sm:$0xf0]  ;;  %v3757_v50 = vor.u32 %v4461_v39, %v3756_v36  ;;  %v3612_v52 = vld [vmem:[#allocation2 + $0x628] sm:$0xf]  ;;  %v4315_v31 = vld [vmem:[#allocation2 + $0x2cc] sm:$0xf] }
  0xb3   :  { %1920 = vmatpush.bf16.msrb.mxu3 %v3821_v56  ;;  %v4393_v51 = vld [vmem:[#allocation2 + $0x534] sm:$0xf0]  ;;  %v3740_v54 = vld [vmem:[#allocation2 + $0x728] sm:$0xf]  ;;  %v3357_v56 = vor.u32 %v4361_v47, %v3356_v44  ;;  %v3182_v36 = vld [vmem:[#allocation2 + $0x2d8] sm:$0xf0]  ;;  %v3057_v47 = vor.u32 %v4283_v26, %v3054_v30 }
  0xb4   :  { %v4425_v53 = vld [vmem:[#allocation2 + $0x634] sm:$0xf0]  ;;  %v3340_v57 = vld [vmem:[#allocation2 + $0x408] sm:$0xf]  ;;  %v3485_v60 = vor.u32 %v4393_v51, %v3484_v48  ;;  %v3310_v44 = vld [vmem:[#allocation2 + $0x3d8] sm:$0xf0]  ;;  %v3185_v48 = vor.u32 %v4315_v31, %v3182_v36 }
  0xb5   :  { %1882 = vmatpush.bf16.msrb.mxu0 %v3421_v62  ;;  %v4457_v55 = vld [vmem:[#allocation2 + $0x734] sm:$0xf0]  ;;  %v3613_v61 = vor.u32 %v4425_v53, %v3612_v52  ;;  %v3468_v62 = vld [vmem:[#allocation2 + $0x508] sm:$0xf]  ;;  %v4279_v51 = vld [vmem:[#allocation2 + $0x1ac] sm:$0xf] }
  0xb6   :  { %1895 = vmatpush.bf16.msrb.mxu1 %v3549_v63  ;;  %1908 = vmatpush.bf16.msrb.mxu2 %v3677_v0  ;;  %v4357_v58 = vld [vmem:[#allocation2 + $0x414] sm:$0xf0]  ;;  %v3596_v0 = vld [vmem:[#allocation2 + $0x608] sm:$0xf]  ;;  %v3741_v2 = vor.u32 %v4457_v55, %v3740_v54  ;;  %v3038_v54 = vld [vmem:[#allocation2 + $0x1b8] sm:$0xf0] }
  0xb7   :  { %1921 = vmatpush.bf16.msrb.mxu3 %v3805_v4  ;;  %v4389_v63 = vld [vmem:[#allocation2 + $0x514] sm:$0xf0]  ;;  %v3724_v4 = vld [vmem:[#allocation2 + $0x708] sm:$0xf]  ;;  %v4311_v55 = vld [vmem:[#allocation2 + $0x2ac] sm:$0xf] }
  0xb8   :  { %v4421_v3 = vld [vmem:[#allocation2 + $0x614] sm:$0xf0]  ;;  %v3469_v15 = vor.u32 %v4389_v63, %v3468_v62  ;;  %v4243_v63 = vld [vmem:[#allocation2 + $0x8c] sm:$0xf] }
  0xb9   :  { %1883 = vmatpush.bf16.msrb.mxu0 %v3405_v10  ;;  %v4453_v5 = vld [vmem:[#allocation2 + $0x714] sm:$0xf0]  ;;  %v3341_v10 = vor.u32 %v4357_v58, %v3340_v57  ;;  %v4343_v57 = vld [vmem:[#allocation2 + $0x3ac] sm:$0xf]  ;;  %v3294_v58 = vld [vmem:[#allocation2 + $0x3b8] sm:$0xf0] }
  0xba   :  { %1896 = vmatpush.bf16.msrb.mxu1 %v3533_v11  ;;  %1909 = vmatpush.bf16.msrb.mxu2 %v3661_v12  ;;  %v3070_v11 = vld [vmem:[#allocation2 + $0x1f8] sm:$0xf0]  ;;  %v4319_v12 = vld [vmem:[#allocation2 + $0x2ec] sm:$0xf]  ;;  %v3725_v19 = vor.u32 %v4453_v5, %v3724_v4 }
  0xbb   :  { %1922 = vmatpush.bf16.msrb.mxu3 %v3789_v16  ;;  %v3597_v16 = vor.u32 %v4421_v3, %v3596_v0  ;;  %v3201_v23 = vor.u32 %v4319_v12, %v3198_v13  ;;  %v2894_v0 = vld [vmem:[#allocation2 + $0x98] sm:$0xf0]  ;;  %v3297_v3 = vor.u32 %v4343_v57, %v3294_v58  ;;  %v4307_v5 = vld [vmem:[#allocation2 + $0x28c] sm:$0xf] }
  0xbc   :  { %v1629_v59 = vpop.f32.mrf.mxu0  ;;  %v3022_v4 = vld [vmem:[#allocation2 + $0x198] sm:$0xf0]  ;;  %v4339_v7 = vld [vmem:[#allocation2 + $0x38c] sm:$0xf]  ;;  %v3153_v12 = vor.u32 %v4307_v5, %v3150_v6 }
  0xbd   :  { %1884 = vmatpush.bf16.msrb.mxu0 %v3389_v22  ;;  %v1630_v1 = vadd.f32 %v1629_v59, %v332_v49  ;;  %v1642_v9 = vpop.f32.mrf.mxu1  ;;  %v3073_v22 = vor.u32 %v4287_v8, %v3070_v11  ;;  %v4247_v49 = vld [vmem:[#allocation2 + $0xac] sm:$0xf]  ;;  %v3278_v8 = vld [vmem:[#allocation2 + $0x398] sm:$0xf0] }
  0xbe   :  { %1897 = vmatpush.bf16.msrb.mxu1 %v3517_v24  ;;  %1910 = vmatpush.bf16.msrb.mxu2 %v3645_v25  ;;  %v4251_v24 = vld [vmem:[#allocation2 + $0xcc] sm:$0xf]  ;;  %v2926_v25 = vld [vmem:[#allocation2 + $0xd8] sm:$0xf0] }
  0xbf   :  { %1923 = vmatpush.bf16.msrb.mxu3 %v3773_v29  ;;  %v1643_v14 = vadd.f32 %v1642_v9, %v1630_v1  ;;  %v3329_v29 = vor.u32 %v4351_v17, %v3326_v18  ;;  %v4275_v1 = vld [vmem:[#allocation2 + $0x18c] sm:$0xf]  ;;  %v2897_v9 = vor.u32 %v4243_v63, %v2894_v0  ;;  %v3281_v18 = vor.u32 %v4339_v7, %v3278_v8  ;;  %v3230_v63 = vld [vmem:[#allocation2 + $0x338] sm:$0xf0] }
  0xc0   :  { %v3025_v11 = vor.u32 %v4275_v1, %v3022_v4  ;;  %v4239_v13 = vld [vmem:[#allocation2 + $0x6c] sm:$0xf]  ;;  %v2958_v6 = vld [vmem:[#allocation2 + $0x118] sm:$0xf0] }
  0xc1   :  { %1885 = vmatpush.bf16.msrb.mxu0 %v3373_v43  ;;  %v1655_v21 = vpop.f32.mrf.mxu2  ;;  %v4347_v43 = vld [vmem:[#allocation2 + $0x3cc] sm:$0xf] }
  0xc2   :  { %1898 = vmatpush.bf16.msrb.mxu1 %v3501_v45  ;;  %1911 = vmatpush.bf16.msrb.mxu2 %v3629_v46  ;;  %v1656_v27 = vadd.f32 %v1655_v21, %v1643_v14  ;;  %v1668_v28 = vpop.f32.mrf.mxu3  ;;  %v2929_v46 = vor.u32 %v4251_v24, %v2926_v25  ;;  %v3313_v53 = vor.u32 %v4347_v43, %v3310_v44  ;;  %v2878_v14 = vld [vmem:[#allocation2 + $0x78] sm:$0xf0]  ;;  %v4267_v30 = vld [vmem:[#allocation2 + $0x14c] sm:$0xf] }
  0xc3   :  { %1924 = vmatpush.bf16.msrb.mxu3 %v3757_v50  ;;  %v2910_v50 = vld [vmem:[#allocation2 + $0xb8] sm:$0xf0]  ;;  %v2881_v25 = vor.u32 %v4239_v13, %v2878_v14  ;;  %v4299_v43 = vld [vmem:[#allocation2 + $0x24c] sm:$0xf] }
  0xc4   :  { %v1631_v39 = vpop.f32.mrf.mxu0  ;;  %v1669_v45 = vadd.f32 %v1668_v28, %v1656_v27  ;;  %v2913_v59 = vor.u32 %v4247_v49, %v2910_v50  ;;  %v3134_v21 = vld [vmem:[#allocation2 + $0x278] sm:$0xf0]  ;;  %v4235_v28 = vld [vmem:[#allocation2 + $0x4c] sm:$0xf] }
  0xc5   :  { %1886 = vmatpush.bf16.msrb.mxu0 %v3357_v56  ;;  %v1644_v52 = vpop.f32.mrf.mxu1  ;;  %v3166_v56 = vld [vmem:[#allocation2 + $0x2b8] sm:$0xf0]  ;;  %v4227_v1 = vld [vmem:[#allocation2 + $0xc] sm:$0xf] }
  0xc6   :  { %1899 = vmatpush.bf16.msrb.mxu1 %v3485_v60  ;;  %1912 = vmatpush.bf16.msrb.mxu2 %v3613_v61  ;;  %v3041_v61 = vor.u32 %v4279_v51, %v3038_v54  ;;  %v3169_v62 = vor.u32 %v4311_v55, %v3166_v56  ;;  %v2990_v39 = vld [vmem:[#allocation2 + $0x158] sm:$0xf0]  ;;  %v4231_v54 = vld [vmem:[#allocation2 + $0x2c] sm:$0xf] }
  0xc7   :  { %1925 = vmatpush.bf16.msrb.mxu3 %v3741_v2  ;;  %v3118_v44 = vld [vmem:[#allocation2 + $0x258] sm:$0xf0]  ;;  %v2993_v52 = vor.u32 %v4267_v30, %v2990_v39  ;;  %v4263_v56 = vld [vmem:[#allocation2 + $0x12c] sm:$0xf] }
  0xc8   :  { %v2846_v55 = vld [vmem:[#allocation2 + $0x38] sm:$0xf0]  ;;  %v4259_v5 = vld [vmem:[#allocation2 + $0x10c] sm:$0xf] }
  0xc9   :  { %1887 = vmatpush.bf16.msrb.mxu0 %v3341_v10  ;;  %v1657_v60 = vpop.f32.mrf.mxu2  ;;  %v2849_v0 = vor.u32 %v4231_v54, %v2846_v55  ;;  %v4291_v7 = vld [vmem:[#allocation2 + $0x20c] sm:$0xf]  ;;  %v3438_v30 = vld [vmem:[#allocation2 + $0x4d8] sm:$0xf0] }
  0xca   :  { %1900 = vmatpush.bf16.msrb.mxu1 %v3469_v15  ;;  %1913 = vmatpush.bf16.msrb.mxu2 %v3597_v16  ;;  %v1670_v2 = vpop.f32.mrf.mxu3  ;;  %v4271_v15 = vld [vmem:[#allocation2 + $0x16c] sm:$0xf]  ;;  %v3566_v39 = vld [vmem:[#allocation2 + $0x5d8] sm:$0xf0] }
  0xcb   :  { %1926 = vmatpush.bf16.msrb.mxu3 %v3725_v19  ;;  %v3006_v19 = vld [vmem:[#allocation2 + $0x178] sm:$0xf0]  ;;  %v4295_v60 = vld [vmem:[#allocation2 + $0x22c] sm:$0xf] }
  0xcc   :  { %1888 = vmatmul.bf16.vlgmr.msrb.gmra.mxu0 %v4702_v37  ;;  %v3009_v26 = vor.u32 %v4271_v15, %v3006_v19  ;;  %v2830_v2 = vld [vmem:[#allocation2 + $0x18] sm:$0xf0]  ;;  %v4383_v14 = vld [vmem:[#allocation2 + $0x4ec] sm:$0xf] }
  0xcd   :  { %1932 = vmatpush.bf16.msra.mxu0 %v2945_v20  ;;  %1914 = vmatmul.bf16.vlgmr.msrb.gmra.mxu2 %v4700_v32  ;;  %v1681_v10 = vpop.f32.mrf.mxu0  ;;  %v4303_v20 = vld [vmem:[#allocation2 + $0x26c] sm:$0xf]  ;;  %v3454_v15 = vld [vmem:[#allocation2 + $0x4f8] sm:$0xf0] }
  0xce   :  { %1945 = vmatpush.bf16.msra.mxu1 %v3073_v22  ;;  %1958 = vmatpush.bf16.msra.mxu2 %v3201_v23  ;;  %v1682_v16 = vadd.f32 %v1681_v10, %v1669_v45  ;;  %v1694_v17 = vpop.f32.mrf.mxu1  ;;  %v4335_v22 = vld [vmem:[#allocation2 + $0x36c] sm:$0xf]  ;;  %v3262_v23 = vld [vmem:[#allocation2 + $0x378] sm:$0xf0]  ;;  %v3137_v27 = vor.u32 %v4303_v20, %v3134_v21  ;;  %v2961_v21 = vor.u32 %v4259_v5, %v2958_v6 }
  0xcf   :  { %1971 = vmatpush.bf16.msra.mxu3 %v3329_v29  ;;  %1901 = vmatmul.bf16.vlgmr.msrb.gmra.mxu1 %v4706_v40  ;;  %v2862_v29 = vld [vmem:[#allocation2 + $0x58] sm:$0xf0]  ;;  %v3265_v36 = vor.u32 %v4335_v22, %v3262_v23  ;;  %v4447_v19 = vld [vmem:[#allocation2 + $0x6ec] sm:$0xf] }
  0xd0   :  { %1927 = vmatmul.bf16.vlgmr.msrb.gmra.mxu3 %v4704_v38  ;;  %v1695_v24 = vadd.f32 %v1694_v17, %v1682_v16  ;;  %v2865_v49 = vor.u32 %v4235_v28, %v2862_v29  ;;  %v3086_v10 = vld [vmem:[#allocation2 + $0x218] sm:$0xf0]  ;;  %v4415_v16 = vld [vmem:[#allocation2 + $0x5ec] sm:$0xf]  ;;  %v2833_v17 = vor.u32 %v4227_v1, %v2830_v2 }
  0xd1   :  { %1933 = vmatpush.bf16.msra.mxu0 %v2929_v46  ;;  %v3710_v20 = vld [vmem:[#allocation2 + $0x6f8] sm:$0xf0]  ;;  %v3089_v22 = vor.u32 %v4291_v7, %v3086_v10  ;;  %v4479_v23 = vld [vmem:[#allocation2 + $0x7ec] sm:$0xf] }
  0xd2   :  { %1946 = vmatpush.bf16.msra.mxu1 %v3057_v47  ;;  %1959 = vmatpush.bf16.msra.mxu2 %v3185_v48  ;;  %v1707_v31 = vpop.f32.mrf.mxu2  ;;  %v4331_v47 = vld [vmem:[#allocation2 + $0x34c] sm:$0xf]  ;;  %v3246_v48 = vld [vmem:[#allocation2 + $0x358] sm:$0xf0]  ;;  %v3713_v28 = vor.u32 %v4447_v19, %v3710_v20 }
  0xd3   :  { %1972 = vmatpush.bf16.msra.mxu3 %v3313_v53  ;;  %v1708_v45 = vadd.f32 %v1707_v31, %v1695_v24  ;;  %v1720_v46 = vpop.f32.mrf.mxu3  ;;  %v3121_v53 = vor.u32 %v4299_v43, %v3118_v44  ;;  %v3249_v58 = vor.u32 %v4331_v47, %v3246_v48  ;;  %v3838_v24 = vld [vmem:[#allocation2 + $0x7f8] sm:$0xf0]  ;;  %v4379_v29 = vld [vmem:[#allocation2 + $0x4cc] sm:$0xf] }
  0xd4   :  { %v4411_v31 = vld [vmem:[#allocation2 + $0x5cc] sm:$0xf]  ;;  %v3694_v44 = vld [vmem:[#allocation2 + $0x6d8] sm:$0xf0]  ;;  %v3441_v47 = vor.u32 %v4379_v29, %v3438_v30 }
  0xd5   :  { %1934 = vmatpush.bf16.msra.mxu0 %v2913_v59  ;;  %v4734_v50 = vadd.f32 %v1720_v46, %v1708_v45  ;;  %v1683_v51 = vpop.f32.mrf.mxu0  ;;  %v2974_v59 = vld [vmem:[#allocation2 + $0x138] sm:$0xf0]  ;;  %v4443_v43 = vld [vmem:[#allocation2 + $0x6cc] sm:$0xf]  ;;  %v3569_v48 = vor.u32 %v4411_v31, %v3566_v39 }
  0xd6   :  { %1947 = vmatpush.bf16.msra.mxu1 %v3041_v61  ;;  %1960 = vmatpush.bf16.msra.mxu2 %v3169_v62  ;;  %v1696_v57 = vpop.f32.mrf.mxu1  ;;  %v3102_v61 = vld [vmem:[#allocation2 + $0x238] sm:$0xf0]  ;;  %v4327_v62 = vld [vmem:[#allocation2 + $0x32c] sm:$0xf] }
  0xd7   :  { %1973 = vmatpush.bf16.msra.mxu3 %v3297_v3  ;;  %v2977_v3 = vor.u32 %v4263_v56, %v2974_v59  ;;  %v3105_v4 = vor.u32 %v4295_v60, %v3102_v61  ;;  %v4475_v45 = vld [vmem:[#allocation2 + $0x7cc] sm:$0xf]  ;;  %v3822_v46 = vld [vmem:[#allocation2 + $0x7d8] sm:$0xf0] }
  0xd8   :  { %v4375_v51 = vld [vmem:[#allocation2 + $0x4ac] sm:$0xf]  ;;  %v3825_v54 = vor.u32 %v4475_v45, %v3822_v46  ;;  %v3550_v55 = vld [vmem:[#allocation2 + $0x5b8] sm:$0xf0] }
  0xd9   :  { %1935 = vmatpush.bf16.msra.mxu0 %v2897_v9  ;;  %v3233_v9 = vor.u32 %v4327_v62, %v3230_v63  ;;  %v4439_v56 = vld [vmem:[#allocation2 + $0x6ac] sm:$0xf]  ;;  %v3678_v57 = vld [vmem:[#allocation2 + $0x6b8] sm:$0xf0] }
  0xda   :  { %1948 = vmatpush.bf16.msra.mxu1 %v3025_v11  ;;  %1961 = vmatpush.bf16.msra.mxu2 %v3153_v12  ;;  %v1709_v8 = vpop.f32.mrf.mxu2  ;;  %v4323_v11 = vld [vmem:[#allocation2 + $0x30c] sm:$0xf]  ;;  %v3214_v12 = vld [vmem:[#allocation2 + $0x318] sm:$0xf0]  ;;  %v3681_v62 = vor.u32 %v4439_v56, %v3678_v57  ;;  %v333_v56 = vperm.slane %v4727_v35, 1 }
  0xdb   :  { %1974 = vmatpush.bf16.msra.mxu3 %v3281_v18  ;;  %v1722_v13 = vpop.f32.mrf.mxu3  ;;  %v3582_v18 = vld [vmem:[#allocation2 + $0x5f8] sm:$0xf0]  ;;  %v4371_v63 = vld [vmem:[#allocation2 + $0x48c] sm:$0xf]  ;;  %v3900_v35 = vld [vmem:[%s5376_s3 + $0x70] sm:$0xf] }
  0xdc   :  { %v3806_v59 = vld [vmem:[#allocation2 + $0x7b8] sm:$0xf0]  ;;  %v4467_v5 = vld [vmem:[#allocation2 + $0x78c] sm:$0xf] }
  0xdd   :  { %1936 = vmatpush.bf16.msra.mxu0 %v2881_v25  ;;  %v3217_v25 = vor.u32 %v4323_v11, %v3214_v12  ;;  %v3534_v2 = vld [vmem:[#allocation2 + $0x598] sm:$0xf0]  ;;  %v4367_v8 = vld [vmem:[#allocation2 + $0x46c] sm:$0xf] }
  0xde   :  { %1949 = vmatpush.bf16.msra.mxu1 %v3009_v26  ;;  %1962 = vmatpush.bf16.msra.mxu2 %v3137_v27  ;;  %v3457_v26 = vor.u32 %v4383_v14, %v3454_v15  ;;  %v3585_v27 = vor.u32 %v4415_v16, %v3582_v18  ;;  %v4399_v10 = vld [vmem:[#allocation2 + $0x56c] sm:$0xf]  ;;  %v3518_v13 = vld [vmem:[#allocation2 + $0x578] sm:$0xf0] }
  0xdf   :  { %1975 = vmatpush.bf16.msra.mxu3 %v3265_v36  ;;  %v3841_v36 = vor.u32 %v4479_v23, %v3838_v24  ;;  %v4431_v14 = vld [vmem:[#allocation2 + $0x66c] sm:$0xf]  ;;  %v3646_v15 = vld [vmem:[#allocation2 + $0x678] sm:$0xf0]  ;;  %v3521_v19 = vor.u32 %v4399_v10, %v3518_v13 }
  0xe0   :  { %v4463_v16 = vld [vmem:[#allocation2 + $0x76c] sm:$0xf]  ;;  %v3649_v20 = vor.u32 %v4431_v14, %v3646_v15  ;;  %v3758_v31 = vld [vmem:[#allocation2 + $0x758] sm:$0xf0]  ;;  %v3892_v15 = vld [vmem:[%s5376_s3 + $0x60] sm:$0xf] }
  0xe1   :  { %1937 = vmatpush.bf16.msra.mxu0 %v2865_v49  ;;  %v3697_v49 = vor.u32 %v4443_v43, %v3694_v44  ;;  %v4395_v23 = vld [vmem:[#allocation2 + $0x54c] sm:$0xf]  ;;  %v3358_v46 = vld [vmem:[#allocation2 + $0x438] sm:$0xf0] }
  0xe2   :  { %1950 = vmatpush.bf16.msra.mxu1 %v2993_v52  ;;  %1963 = vmatpush.bf16.msra.mxu2 %v3121_v53  ;;  %v3422_v52 = vld [vmem:[#allocation2 + $0x4b8] sm:$0xf0]  ;;  %v4407_v53 = vld [vmem:[#allocation2 + $0x5ac] sm:$0xf] }
  0xe3   :  { %1976 = vmatpush.bf16.msra.mxu3 %v3249_v58  ;;  %v4471_v58 = vld [vmem:[#allocation2 + $0x7ac] sm:$0xf]  ;;  %v3425_v60 = vor.u32 %v4375_v51, %v3422_v52  ;;  %v3553_v61 = vor.u32 %v4407_v53, %v3550_v55  ;;  %v3486_v51 = vld [vmem:[#allocation2 + $0x538] sm:$0xf0] }
  0xe4   :  { %v3809_v1 = vor.u32 %v4471_v58, %v3806_v59  ;;  %v4459_v30 = vld [vmem:[#allocation2 + $0x74c] sm:$0xf]  ;;  %v3614_v53 = vld [vmem:[#allocation2 + $0x638] sm:$0xf0] }
  0xe5   :  { %1938 = vmatpush.bf16.msra.mxu0 %v2849_v0  ;;  %v3406_v0 = vld [vmem:[#allocation2 + $0x498] sm:$0xf0]  ;;  %v4359_v45 = vld [vmem:[#allocation2 + $0x42c] sm:$0xf] }
  0xe6   :  { %1951 = vmatpush.bf16.msra.mxu1 %v2977_v3  ;;  %1964 = vmatpush.bf16.msra.mxu2 %v3105_v4  ;;  %v4435_v3 = vld [vmem:[#allocation2 + $0x68c] sm:$0xf]  ;;  %v3662_v4 = vld [vmem:[#allocation2 + $0x698] sm:$0xf0]  ;;  %v3361_v57 = vor.u32 %v4359_v45, %v3358_v46  ;;  %v3932_v45 = vld [vmem:[%s5376_s3 + $0xb0] sm:$0xf] }
  0xe7   :  { %1977 = vmatpush.bf16.msra.mxu3 %v3233_v9  ;;  %v3665_v7 = vor.u32 %v4435_v3, %v3662_v4  ;;  %v3390_v9 = vld [vmem:[#allocation2 + $0x478] sm:$0xf0]  ;;  %v4423_v52 = vld [vmem:[#allocation2 + $0x62c] sm:$0xf] }
  0xe8   :  { %v3393_v18 = vor.u32 %v4367_v8, %v3390_v9  ;;  %v3742_v55 = vld [vmem:[#allocation2 + $0x738] sm:$0xf0]  ;;  %v4355_v58 = vld [vmem:[#allocation2 + $0x40c] sm:$0xf]  ;;  %v4513_v8 = vld [vmem:[%s5376_s3 + $0xf4] sm:$0xf0] }
  0xe9   :  { %1939 = vmatpush.bf16.msra.mxu0 %v2833_v17  ;;  %v4740_v6 = vpop.f32.mrf.mxu0  ;;  %v3774_v17 = vld [vmem:[#allocation2 + $0x778] sm:$0xf0]  ;;  %v4451_v3 = vld [vmem:[#allocation2 + $0x70c] sm:$0xf] }
  0xea   :  { %1952 = vmatpush.bf16.msra.mxu1 %v2961_v21  ;;  %1965 = vmatpush.bf16.msra.mxu2 %v3089_v22  ;;  %v4363_v21 = vld [vmem:[#allocation2 + $0x44c] sm:$0xf]  ;;  %v3374_v22 = vld [vmem:[#allocation2 + $0x458] sm:$0xf0] }
  0xeb   :  { %1978 = vmatpush.bf16.msra.mxu3 %v3217_v25  ;;  %v3777_v25 = vor.u32 %v4463_v16, %v3774_v17  ;;  %v4495_v16 = vld [vmem:[%s5376_s3 + $0x64] sm:$0xf0]  ;;  %v3956_v17 = vld [vmem:[%s5376_s3 + $0xe0] sm:$0xf] }
  0xec   :  { %1940 = vmatmul.bf16.vlgmr.msra.gmra.mxu0 %v4687_v34  ;;  %v3790_v34 = vld [vmem:[#allocation2 + $0x798] sm:$0xf0]  ;;  %v4742_v11 = vpop.f32.mrf.mxu1 }
  0xed   :  { %1984 = vmatpush.bf16.msrb.mxu0 %v3457_v26  ;;  %1966 = vmatmul.bf16.vlgmr.msra.gmra.mxu2 %v4685_v33  ;;  %v4403_v33 = vld [vmem:[#allocation2 + $0x58c] sm:$0xf]  ;;  %v3793_v12 = vor.u32 %v4467_v5, %v3790_v34  ;;  %v3502_v26 = vld [vmem:[#allocation2 + $0x558] sm:$0xf0]  ;;  %v4497_v34 = vld [vmem:[%s5376_s3 + $0x74] sm:$0xf0] }
  0xee   :  { %1997 = vmatpush.bf16.msrb.mxu1 %v3585_v27  ;;  %2010 = vmatpush.bf16.msrb.mxu2 %v3713_v28  ;;  %v4427_v27 = vld [vmem:[#allocation2 + $0x64c] sm:$0xf]  ;;  %v3630_v28 = vld [vmem:[#allocation2 + $0x658] sm:$0xf0]  ;;  %v3505_v43 = vor.u32 %v4395_v23, %v3502_v26  ;;  %v3901_v13 = vor.u32 %v4497_v34, %v3900_v35  ;;  %v3948_v23 = vld [vmem:[%s5376_s3 + $0xd0] sm:$0xf] }
  0xef   :  { %2023 = vmatpush.bf16.msrb.mxu3 %v3841_v36  ;;  %1953 = vmatmul.bf16.vlgmr.msra.gmra.mxu1 %v4691_v42  ;;  %v3537_v42 = vor.u32 %v4403_v33, %v3534_v2  ;;  %v3377_v36 = vor.u32 %v4363_v21, %v3374_v22  ;;  %v3633_v44 = vor.u32 %v4427_v27, %v3630_v28  ;;  %v3598_v2 = vld [vmem:[#allocation2 + $0x618] sm:$0xf0]  ;;  %v3884_v21 = vld [vmem:[%s5376_s3 + $0x50] sm:$0xf]  ;;  %v4493_v22 = vld [vmem:[%s5376_s3 + $0x54] sm:$0xf0] }
  0xf0   :  { %1979 = vmatmul.bf16.vlgmr.msra.gmra.mxu3 %v4689_v41  ;;  %v3409_v41 = vor.u32 %v4371_v63, %v3406_v0  ;;  %v4744_v24 = vpop.f32.mrf.mxu2  ;;  %v3470_v63 = vld [vmem:[#allocation2 + $0x518] sm:$0xf0]  ;;  %v3940_v27 = vld [vmem:[%s5376_s3 + $0xc0] sm:$0xf]  ;;  %v4028_v28 = vld [vmem:[%s5376_s3 + $0x170] sm:$0xf] }
  0xf1   :  { %1985 = vmatpush.bf16.msrb.mxu0 %v3441_v47  ;;  %v1735_v39 = vpop.f32.mrf.mxu0  ;;  %v4391_v47 = vld [vmem:[#allocation2 + $0x52c] sm:$0xf]  ;;  %v3726_v5 = vld [vmem:[#allocation2 + $0x718] sm:$0xf0]  ;;  %v3916_v35 = vld [vmem:[%s5376_s3 + $0x90] sm:$0xf] }
  0xf2   :  { %1998 = vmatpush.bf16.msrb.mxu1 %v3569_v48  ;;  %2011 = vmatpush.bf16.msrb.mxu2 %v3697_v49  ;;  %v3761_v49 = vor.u32 %v4459_v30, %v3758_v31  ;;  %v3489_v59 = vor.u32 %v4391_v47, %v3486_v51  ;;  %v4527_v51 = vld [vmem:[%s5376_s3 + $0x164] sm:$0xf0] }
  0xf3   :  { %2024 = vmatpush.bf16.msrb.mxu3 %v3825_v54  ;;  %v4746_v29 = vpop.f32.mrf.mxu3  ;;  %v4455_v54 = vld [vmem:[#allocation2 + $0x72c] sm:$0xf] }
  0xf4   :  { %v1748_v48 = vpop.f32.mrf.mxu1  ;;  %v3745_v33 = vor.u32 %v4455_v54, %v3742_v55 }
  0xf5   :  { %1986 = vmatpush.bf16.msrb.mxu0 %v3425_v60  ;;  %v3617_v60 = vor.u32 %v4423_v52, %v3614_v53  ;;  %v4505_v48 = vld [vmem:[%s5376_s3 + $0xb4] sm:$0xf0] }
  0xf6   :  { %1999 = vmatpush.bf16.msrb.mxu1 %v3553_v61  ;;  %2012 = vmatpush.bf16.msrb.mxu2 %v3681_v62  ;;  %v3342_v61 = vld [vmem:[#allocation2 + $0x418] sm:$0xf0]  ;;  %v4387_v62 = vld [vmem:[#allocation2 + $0x50c] sm:$0xf]  ;;  %v3933_v55 = vor.u32 %v4505_v48, %v3932_v45  ;;  %v4517_v45 = vld [vmem:[%s5376_s3 + $0x114] sm:$0xf0] }
  0xf7   :  { %2025 = vmatpush.bf16.msrb.mxu3 %v3809_v1  ;;  %v4419_v1 = vld [vmem:[#allocation2 + $0x60c] sm:$0xf]  ;;  %v3473_v9 = vor.u32 %v4387_v62, %v3470_v63  ;;  %v4012_v62 = vld [vmem:[%s5376_s3 + $0x150] sm:$0xf]  ;;  %v4525_v63 = vld [vmem:[%s5376_s3 + $0x154] sm:$0xf0] }
  0xf8   :  { %v1761_v0 = vpop.f32.mrf.mxu2  ;;  %v3601_v10 = vor.u32 %v4419_v1, %v3598_v2  ;;  %v3886_v48 = vld [vmem:[%s5376_s3 + $0x58] sm:$0xf0] }
  0xf9   :  { %1987 = vmatpush.bf16.msrb.mxu0 %v3409_v41  ;;  %v1734_v41 = vadd.f32 %v4740_v6, %v333_v56  ;;  %v3860_v56 = vld [vmem:[%s5376_s3 + $0x20] sm:$0xf]  ;;  %v4013_v0 = vor.u32 %v4525_v63, %v4012_v62  ;;  %v4506_v62 = vld [vmem:[%s5376_s3 + $0xc4] sm:$0xf]  ;;  %v3942_v63 = vld [vmem:[%s5376_s3 + $0xc8] sm:$0xf0] }
  0xfa   :  { %2000 = vmatpush.bf16.msrb.mxu1 %v3537_v42  ;;  %2013 = vmatpush.bf16.msrb.mxu2 %v3665_v7  ;;  %v3345_v42 = vor.u32 %v4355_v58, %v3342_v61  ;;  %v3964_v7 = vld [vmem:[%s5376_s3 + $0xf0] sm:$0xf]  ;;  %v3924_v58 = vld [vmem:[%s5376_s3 + $0xa0] sm:$0xf] }
  0xfb   :  { %2026 = vmatpush.bf16.msrb.mxu3 %v3793_v12  ;;  %v1774_v4 = vpop.f32.mrf.mxu3  ;;  %v3729_v12 = vor.u32 %v4451_v3, %v3726_v5  ;;  %v3965_v14 = vor.u32 %v4513_v8, %v3964_v7  ;;  %v1747_v6 = vadd.f32 %v4742_v11, %v1734_v41  ;;  %v3893_v11 = vor.u32 %v4495_v16, %v3892_v15  ;;  %v4485_v5 = vld [vmem:[%s5376_s3 + $0x14] sm:$0xf0]  ;;  %v4523_v7 = vld [vmem:[%s5376_s3 + $0x144] sm:$0xf0]  ;;  %v4496_v16 = vld [vmem:[%s5376_s3 + $0x74] sm:$0xf] }
  0xfc   :  { %v3852_v4 = vld [vmem:[%s5376_s3 + $0x10] sm:$0xf]  ;;  %v4501_v41 = vld [vmem:[%s5376_s3 + $0x94] sm:$0xf0]  ;;  %v4499_v15 = vld [vmem:[%s5376_s3 + $0x84] sm:$0xf0] }
  0xfd   :  { %1988 = vmatpush.bf16.msrb.mxu0 %v3393_v18  ;;  %v4511_v18 = vld [vmem:[%s5376_s3 + $0xe4] sm:$0xf0] }
  0xfe   :  { %2001 = vmatpush.bf16.msrb.mxu1 %v3521_v19  ;;  %2014 = vmatpush.bf16.msrb.mxu2 %v3649_v20  ;;  %v3957_v19 = vor.u32 %v4511_v18, %v3956_v17  ;;  %v1760_v20 = vadd.f32 %v4744_v24, %v1747_v6  ;;  %v3885_v24 = vor.u32 %v4493_v22, %v3884_v21  ;;  %v3908_v6 = vld [vmem:[%s5376_s3 + $0x80] sm:$0xf]  ;;  %v3902_v18 = vld [vmem:[%s5376_s3 + $0x78] sm:$0xf0]  ;;  %v4512_v21 = vld [vmem:[%s5376_s3 + $0xf4] sm:$0xf] }
  0xff   :  { %2027 = vmatpush.bf16.msrb.mxu3 %v3777_v25  ;;  %v3966_v22 = vld [vmem:[%s5376_s3 + $0xf8] sm:$0xf0] }
 0x100   :  { %v1773_v25 = vadd.f32 %v4746_v29, %v1760_v20  ;;  %v4529_v29 = vld [vmem:[%s5376_s3 + $0x174] sm:$0xf0] }
 0x101   :  { %1989 = vmatpush.bf16.msrb.mxu0 %v3377_v36  ;;  %v4029_v30 = vor.u32 %v4529_v29, %v4028_v28  ;;  %v4521_v20 = vld [vmem:[%s5376_s3 + $0x134] sm:$0xf0]  ;;  %v3988_v28 = vld [vmem:[%s5376_s3 + $0x120] sm:$0xf]  ;;  %v4510_v29 = vld [vmem:[%s5376_s3 + $0xe4] sm:$0xf] }
 0x102   :  { %2002 = vmatpush.bf16.msrb.mxu1 %v3505_v43  ;;  %2015 = vmatpush.bf16.msrb.mxu2 %v3633_v44  ;;  %v3868_v43 = vld [vmem:[%s5376_s3 + $0x30] sm:$0xf]  ;;  %v4489_v44 = vld [vmem:[%s5376_s3 + $0x34] sm:$0xf0] }
 0x103   :  { %2028 = vmatpush.bf16.msrb.mxu3 %v3761_v49  ;;  %v4020_v49 = vld [vmem:[%s5376_s3 + $0x160] sm:$0xf]  ;;  %v3869_v53 = vor.u32 %v4489_v44, %v3868_v43  ;;  %v3980_v44 = vld [vmem:[%s5376_s3 + $0x110] sm:$0xf] }
 0x104   :  { %v4021_v52 = vor.u32 %v4527_v51, %v4020_v49  ;;  %v4508_v49 = vld [vmem:[%s5376_s3 + $0xd4] sm:$0xf]  ;;  %v3981_v51 = vor.u32 %v4517_v45, %v3980_v44  ;;  %v3910_v44 = vld [vmem:[%s5376_s3 + $0x88] sm:$0xf0] }
 0x105   :  { %1990 = vmatpush.bf16.msrb.mxu0 %v3361_v57  ;;  %v4487_v57 = vld [vmem:[%s5376_s3 + $0x24] sm:$0xf0] }
 0x106   :  { %2003 = vmatpush.bf16.msrb.mxu1 %v3489_v59  ;;  %2016 = vmatpush.bf16.msrb.mxu2 %v3617_v60  ;;  %v4503_v60 = vld [vmem:[%s5376_s3 + $0xa4] sm:$0xf0] }
 0x107   :  { %2029 = vmatpush.bf16.msrb.mxu3 %v3745_v33  ;;  %v3861_v33 = vor.u32 %v4487_v57, %v3860_v56  ;;  %v3925_v3 = vor.u32 %v4503_v60, %v3924_v58  ;;  %v4030_v56 = vld [vmem:[%s5376_s3 + $0x178] sm:$0xf0]  ;;  %v3878_v60 = vld [vmem:[%s5376_s3 + $0x48] sm:$0xf0] }
 0x109   :  { %1991 = vmatpush.bf16.msrb.mxu0 %v3345_v42  ;;  %v1785_v36 = vpop.f32.mrf.mxu0  ;;  %v4004_v42 = vld [vmem:[%s5376_s3 + $0x140] sm:$0xf] }
 0x10a   :  { %2004 = vmatpush.bf16.msrb.mxu1 %v3473_v9  ;;  %2017 = vmatpush.bf16.msrb.mxu2 %v3601_v10  ;;  %v1786_v46 = vadd.f32 %v1785_v36, %v1773_v25  ;;  %v4005_v8 = vor.u32 %v4523_v7, %v4004_v42  ;;  %v3853_v10 = vor.u32 %v4485_v5, %v3852_v4  ;;  %v2036_v25 = vmax.f32 %v4734_v50, 0.0  ;;  %v4519_v50 = vld [vmem:[%s5376_s3 + $0x124] sm:$0xf0]  ;;  %v4504_v4 = vld [vmem:[%s5376_s3 + $0xb4] sm:$0xf] }
 0x10b   :  { %2030 = vmatpush.bf16.msrb.mxu3 %v3729_v12  ;;  %v3844_v12 = vld [vmem:[%s5376_s3] sm:$0xf]  ;;  %v4022_v42 = vld [vmem:[%s5376_s3 + $0x168] sm:$0xf0] }
 0x10c   :  { %1992 = vmatmul.bf16.vlgmr.msrb.gmra.mxu0 %v4702_v37  ;;  %v4509_v37 = vld [vmem:[%s5376_s3 + $0xd4] sm:$0xf0]  ;;  %v1798_v47 = vpop.f32.mrf.mxu1 }
 0x10d   :  { %2434 = vmatpush.bf16.msra.mxu0 %v3901_v13  ;;  %2005 = vmatmul.bf16.vlgmr.msrb.gmra.mxu1 %v4706_v40  ;;  %v3949_v26 = vor.u32 %v4509_v37, %v3948_v23  ;;  %v4491_v40 = vld [vmem:[%s5376_s3 + $0x44] sm:$0xf0]  ;;  %v1799_v54 = vadd.f32 %v1798_v47, %v1786_v46  ;;  %v4492_v47 = vld [vmem:[%s5376_s3 + $0x54] sm:$0xf] }
 0x10e   :  { %2447 = vmatpush.bf16.msra.mxu1 %v3965_v14  ;;  %2018 = vmatmul.bf16.vlgmr.msrb.gmra.mxu2 %v4700_v32  ;;  %v3876_v32 = vld [vmem:[%s5376_s3 + $0x40] sm:$0xf]  ;;  %v4483_v13 = vld [vmem:[%s5376_s3 + $0x4] sm:$0xf0]  ;;  %v3917_v14 = vor.u32 %v4501_v41, %v3916_v35  ;;  %v3889_v57 = vor.u32 %v4492_v47, %v3886_v48  ;;  %v3934_v35 = vld [vmem:[%s5376_s3 + $0xb8] sm:$0xf0] }
 0x10f   :  { %2031 = vmatmul.bf16.vlgmr.msrb.gmra.mxu3 %v4704_v38  ;;  %v4507_v38 = vld [vmem:[%s5376_s3 + $0xc4] sm:$0xf0]  ;;  %v3877_v31 = vor.u32 %v4491_v40, %v3876_v32  ;;  %2460 = vmatpush.bf16.msra.mxu2 %v4029_v30  ;;  %v3905_v32 = vor.u32 %v4496_v16, %v3902_v18  ;;  %v4494_v40 = vld [vmem:[%s5376_s3 + $0x64] sm:$0xf]  ;;  %v3958_v30 = vld [vmem:[%s5376_s3 + $0xe8] sm:$0xf0] }
 0x110   :  { %v3941_v39 = vor.u32 %v4507_v38, %v3940_v27  ;;  %v1811_v59 = vpop.f32.mrf.mxu2  ;;  %v3969_v27 = vor.u32 %v4512_v21, %v3966_v22  ;;  %v3894_v38 = vld [vmem:[%s5376_s3 + $0x68] sm:$0xf0]  ;;  %v3961_v46 = vor.u32 %v4510_v29, %v3958_v30  ;;  %v4526_v41 = vld [vmem:[%s5376_s3 + $0x164] sm:$0xf]  ;;  %v4014_v16 = vld [vmem:[%s5376_s3 + $0x158] sm:$0xf0] }
 0x111   :  { %2435 = vmatpush.bf16.msra.mxu0 %v3893_v11  ;;  %v1812_v1 = vadd.f32 %v1811_v59, %v1799_v54  ;;  %v1787_v2 = vpop.f32.mrf.mxu0  ;;  %v3897_v43 = vor.u32 %v4494_v40, %v3894_v38  ;;  %v4515_v54 = vld [vmem:[%s5376_s3 + $0x104] sm:$0xf0]  ;;  %v4490_v59 = vld [vmem:[%s5376_s3 + $0x44] sm:$0xf]  ;;  %v4025_v7 = vor.u32 %v4526_v41, %v4022_v42  ;;  %v3854_v21 = vld [vmem:[%s5376_s3 + $0x18] sm:$0xf0] }
 0x112   :  { %2448 = vmatpush.bf16.msra.mxu1 %v3957_v19  ;;  %v3996_v19 = vld [vmem:[%s5376_s3 + $0x130] sm:$0xf]  ;;  %v4488_v2 = vld [vmem:[%s5376_s3 + $0x34] sm:$0xf]  ;;  %v3846_v29 = vld [vmem:[%s5376_s3 + $0x8] sm:$0xf0] }
 0x113   :  { %2461 = vmatpush.bf16.msra.mxu2 %v4021_v52  ;;  %v1824_v61 = vpop.f32.mrf.mxu3  ;;  %v3997_v23 = vor.u32 %v4521_v20, %v3996_v19  ;;  %v3950_v52 = vld [vmem:[%s5376_s3 + $0xd8] sm:$0xf0]  ;;  %v4484_v20 = vld [vmem:[%s5376_s3 + $0x14] sm:$0xf]  ;;  %v4518_v48 = vld [vmem:[%s5376_s3 + $0x124] sm:$0xf] }
 0x114   :  { %v1800_v34 = vpop.f32.mrf.mxu1  ;;  %v1825_v9 = vadd.f32 %v1824_v61, %v1812_v1  ;;  %v3953_v58 = vor.u32 %v4508_v49, %v3950_v52  ;;  %v3945_v1 = vor.u32 %v4506_v62, %v3942_v63  ;;  %v4500_v22 = vld [vmem:[%s5376_s3 + $0x94] sm:$0xf]  ;;  %v3857_v40 = vor.u32 %v4484_v20, %v3854_v21  ;;  %v3990_v49 = vld [vmem:[%s5376_s3 + $0x128] sm:$0xf0]  ;;  %v4514_v62 = vld [vmem:[%s5376_s3 + $0x104] sm:$0xf] }
 0x115   :  { %2436 = vmatpush.bf16.msra.mxu0 %v3885_v24  ;;  %v3845_v24 = vor.u32 %v4483_v13, %v3844_v12  ;;  %v3862_v12 = vld [vmem:[%s5376_s3 + $0x28] sm:$0xf0]  ;;  %v4502_v13 = vld [vmem:[%s5376_s3 + $0xa4] sm:$0xf]  ;;  %v4520_v30 = vld [vmem:[%s5376_s3 + $0x134] sm:$0xf] }
 0x116   :  { %2449 = vmatpush.bf16.msra.mxu1 %v3949_v26  ;;  %v2037_v37 = vmax.f32 %v1825_v9, 0.0  ;;  %v3909_v26 = vor.u32 %v4499_v15, %v3908_v6  ;;  %v3937_v9 = vor.u32 %v4504_v4, %v3934_v35  ;;  %v4524_v15 = vld [vmem:[%s5376_s3 + $0x154] sm:$0xf]  ;;  %v3974_v63 = vld [vmem:[%s5376_s3 + $0x108] sm:$0xf0] }
 0x117   :  { %2462 = vmatpush.bf16.msra.mxu2 %v4013_v0  ;;  %v4017_v18 = vor.u32 %v4524_v15, %v4014_v16  ;;  %v4076_v4 = vld [vmem:[%s5376_s3 + $0x1d0] sm:$0xf]  ;;  %v4535_v20 = vld [vmem:[%s5376_s3 + $0x1a4] sm:$0xf0] }
 0x118   :  { %v1813_v17 = vpop.f32.mrf.mxu2  ;;  %v4914_v36 = vpack.c.bf16 %v2037_v37, %v2037_v37  ;;  %v3918_v37 = vld [vmem:[%s5376_s3 + $0x98] sm:$0xf0] }
 0x119   :  { %2437 = vmatpush.bf16.msra.mxu0 %v3877_v31  ;;  %v3989_v31 = vor.u32 %v4519_v50, %v3988_v28  ;;  %v4482_v28 = vld [vmem:[%s5376_s3 + $0x4] sm:$0xf]  ;;  %v3921_v50 = vor.u32 %v4500_v22, %v3918_v37 }
 0x11a   :  { %2450 = vmatpush.bf16.msra.mxu1 %v3941_v39  ;;  %v4916_v39 = vpack.c.bf16 %v2036_v25, %v2036_v25  ;;  %v4522_v25 = vld [vmem:[%s5376_s3 + $0x144] sm:$0xf] }
 0x11b   :  { %2463 = vmatpush.bf16.msra.mxu2 %v4005_v8  ;;  %v1826_v11 = vpop.f32.mrf.mxu3 }
 0x11d   :  { %2438 = vmatpush.bf16.msra.mxu0 %v3869_v53  ;;  %v3972_v53 = vld [vmem:[%s5376_s3 + $0x100] sm:$0xf] }
 0x11e   :  { %2451 = vmatpush.bf16.msra.mxu1 %v3933_v55  ;;  %v4528_v55 = vld [vmem:[%s5376_s3 + $0x174] sm:$0xf]  ;;  %v3973_v61 = vor.u32 %v4515_v54, %v3972_v53  ;;  %v3849_v53 = vor.u32 %v4482_v28, %v3846_v29  ;;  %v4545_v54 = vld [vmem:[%s5376_s3 + $0x1f4] sm:$0xf0] }
 0x11f   :  { %2464 = vmatpush.bf16.msra.mxu2 %v3997_v23  ;;  %v4033_v0 = vor.u32 %v4528_v55, %v4030_v56  ;;  %v4544_v28 = vld [vmem:[%s5376_s3 + $0x1f4] sm:$0xf] }
 0x121   :  { %2439 = vmatpush.bf16.msra.mxu0 %v3861_v33  ;;  %v3881_v33 = vor.u32 %v4490_v59, %v3878_v60  ;;  %v3982_v59 = vld [vmem:[%s5376_s3 + $0x118] sm:$0xf0] }
 0x122   :  { %2452 = vmatpush.bf16.msra.mxu1 %v3925_v3  ;;  %v3870_v3 = vld [vmem:[%s5376_s3 + $0x38] sm:$0xf0] }
 0x123   :  { %2465 = vmatpush.bf16.msra.mxu2 %v3989_v31  ;;  %v3873_v8 = vor.u32 %v4488_v2, %v3870_v3  ;;  %v3998_v31 = vld [vmem:[%s5376_s3 + $0x138] sm:$0xf0]  ;;  %v4084_v2 = vld [vmem:[%s5376_s3 + $0x1e0] sm:$0xf] }
 0x125   :  { %2440 = vmatpush.bf16.msra.mxu0 %v3853_v10  ;;  %v4486_v10 = vld [vmem:[%s5376_s3 + $0x24] sm:$0xf] }
 0x126   :  { %2453 = vmatpush.bf16.msra.mxu1 %v3917_v14  ;;  %v3926_v14 = vld [vmem:[%s5376_s3 + $0xa8] sm:$0xf0]  ;;  %v3865_v11 = vor.u32 %v4486_v10, %v3862_v12 }
 0x127   :  { %2466 = vmatpush.bf16.msra.mxu2 %v3981_v51  ;;  %v3929_v19 = vor.u32 %v4502_v13, %v3926_v14  ;;  %v4092_v51 = vld [vmem:[%s5376_s3 + $0x1f0] sm:$0xf] }
 0x128   :  { %v4093_v56 = vor.u32 %v4545_v54, %v4092_v51  ;;  %v4060_v14 = vld [vmem:[%s5376_s3 + $0x1b0] sm:$0xf] }
 0x129   :  { %2441 = vmatpush.bf16.msra.mxu0 %v3845_v24  ;;  %v1837_v5 = vpop.f32.mrf.mxu0 }
 0x12a   :  { %2454 = vmatpush.bf16.msra.mxu1 %v3909_v26  ;;  %v4006_v26 = vld [vmem:[%s5376_s3 + $0x148] sm:$0xf0]  ;;  %2473 = vmatpush.bf16.msra.mxu3 %v4093_v56 }
 0x12b   :  { %2467 = vmatpush.bf16.msra.mxu2 %v3973_v61 }
 0x12c   :  { %2442 = vmatmul.bf16.vlgmr.msra.gmra.mxu0 %v4916_v39  ;;  %v4974_v34 = vpop.f32.mrf.mxu1 }
 0x12d   :  { %2486 = vmatpush.bf16.msrb.mxu0 %v3905_v32  ;;  %2455 = vmatmul.bf16.vlgmr.msra.gmra.mxu1 %v4914_v36  ;;  %v4009_v32 = vor.u32 %v4522_v25, %v4006_v26  ;;  %v4533_v25 = vld [vmem:[%s5376_s3 + $0x194] sm:$0xf0] }
 0x12e   :  { %2499 = vmatpush.bf16.msrb.mxu1 %v3969_v27  ;;  %v5021_v27 = vld [vmem:[%s5375_s2] sm:$0xf] }
 0x12f   :  { %2512 = vmatpush.bf16.msrb.mxu2 %v4033_v0  ;;  %v334_v38 = vperm.slane %v5021_v27, 2 }
 0x130   :  { %v1863_v6 = vpop.f32.mrf.mxu2 }
 0x131   :  { %2487 = vmatpush.bf16.msrb.mxu0 %v3897_v43  ;;  %v1839_v23 = vpop.f32.mrf.mxu0  ;;  %v4498_v43 = vld [vmem:[%s5376_s3 + $0x84] sm:$0xf]  ;;  %v1838_v52 = vadd.f32 %v1837_v5, %v334_v38 }
 0x132   :  { %2500 = vmatpush.bf16.msrb.mxu1 %v3961_v46  ;;  %v4001_v46 = vor.u32 %v4520_v30, %v3998_v31  ;;  %v3913_v55 = vor.u32 %v4498_v43, %v3910_v44  ;;  %v4542_v30 = vld [vmem:[%s5376_s3 + $0x1e4] sm:$0xf]  ;;  %v4086_v31 = vld [vmem:[%s5376_s3 + $0x1e8] sm:$0xf0] }
 0x133   :  { %2513 = vmatpush.bf16.msrb.mxu2 %v4025_v7  ;;  %v1876_v17 = vpop.f32.mrf.mxu3  ;;  %v1851_v60 = vadd.f32 %v4974_v34, %v1838_v52  ;;  %v4068_v7 = vld [vmem:[%s5376_s3 + $0x1c0] sm:$0xf]  ;;  %v4089_v44 = vor.u32 %v4542_v30, %v4086_v31  ;;  %v4538_v52 = vld [vmem:[%s5376_s3 + $0x1c4] sm:$0xf]  ;;  %v4561_v30 = vld [vmem:[%s5378_s5 + $0x74] sm:$0xf0] }
 0x134   :  { %v1852_v24 = vpop.f32.mrf.mxu1  ;;  %v4560_v31 = vld [vmem:[%s5378_s5 + $0x74] sm:$0xf] }
 0x135   :  { %2488 = vmatpush.bf16.msrb.mxu0 %v3889_v57  ;;  %v3993_v57 = vor.u32 %v4518_v48, %v3990_v49  ;;  %v1864_v0 = vadd.f32 %v1863_v6, %v1851_v60  ;;  %v4537_v6 = vld [vmem:[%s5376_s3 + $0x1b4] sm:$0xf0]  ;;  %v4044_v24 = vld [vmem:[%s5376_s3 + $0x190] sm:$0xf] }
 0x136   :  { %2501 = vmatpush.bf16.msrb.mxu1 %v3953_v58  ;;  %v4516_v58 = vld [vmem:[%s5376_s3 + $0x114] sm:$0xf]  ;;  %v4045_v26 = vor.u32 %v4533_v25, %v4044_v24 }
 0x137   :  { %2514 = vmatpush.bf16.msrb.mxu2 %v4017_v18  ;;  %v3985_v61 = vor.u32 %v4516_v58, %v3982_v59  ;;  %v4061_v18 = vor.u32 %v4537_v6, %v4060_v14  ;;  %v4062_v58 = vld [vmem:[%s5376_s3 + $0x1b8] sm:$0xf0]  ;;  %v335_v59 = vperm.slane %v5021_v27, 3 }
 0x138   :  { %v1865_v45 = vpop.f32.mrf.mxu2  ;;  %v4046_v27 = vld [vmem:[%s5376_s3 + $0x198] sm:$0xf0] }
 0x139   :  { %2489 = vmatpush.bf16.msrb.mxu0 %v3881_v33  ;;  %v3977_v33 = vor.u32 %v4514_v62, %v3974_v63  ;;  %v4054_v62 = vld [vmem:[%s5376_s3 + $0x1a8] sm:$0xf0] }
 0x13a   :  { %2502 = vmatpush.bf16.msrb.mxu1 %v3945_v1  ;;  %v1877_v1 = vadd.f32 %v1876_v17, %v1864_v0 }
 0x13b   :  { %2515 = vmatpush.bf16.msrb.mxu2 %v4009_v32  ;;  %v1878_v47 = vpop.f32.mrf.mxu3  ;;  %v4036_v32 = vld [vmem:[%s5376_s3 + $0x180] sm:$0xf] }
 0x13c   :  { %v4078_v47 = vld [vmem:[%s5376_s3 + $0x1d8] sm:$0xf0] }
 0x13d   :  { %2490 = vmatpush.bf16.msrb.mxu0 %v3873_v8  ;;  %v4539_v8 = vld [vmem:[%s5376_s3 + $0x1c4] sm:$0xf0] }
 0x13e   :  { %2503 = vmatpush.bf16.msrb.mxu1 %v3937_v9  ;;  %v4069_v10 = vor.u32 %v4539_v8, %v4068_v7 }
 0x13f   :  { %2516 = vmatpush.bf16.msrb.mxu2 %v4001_v46  ;;  %v4540_v46 = vld [vmem:[%s5376_s3 + $0x1d4] sm:$0xf] }
 0x140   :  { %v4081_v48 = vor.u32 %v4540_v46, %v4078_v47  ;;  %v4559_v46 = vld [vmem:[%s5378_s5 + $0x64] sm:$0xf0] }
 0x141   :  { %2491 = vmatpush.bf16.msrb.mxu0 %v3865_v11 }
 0x142   :  { %2504 = vmatpush.bf16.msrb.mxu1 %v3929_v19  ;;  %v4052_v19 = vld [vmem:[%s5376_s3 + $0x1a0] sm:$0xf] }
 0x143   :  { %2517 = vmatpush.bf16.msrb.mxu2 %v3993_v57  ;;  %v4053_v23 = vor.u32 %v4535_v20, %v4052_v19  ;;  %v4536_v57 = vld [vmem:[%s5376_s3 + $0x1b4] sm:$0xf] }
 0x144   :  { %v4065_v60 = vor.u32 %v4536_v57, %v4062_v58  ;;  %v4220_v57 = vld [vmem:[%s5378_s5 + $0xf0] sm:$0xf]  ;;  %v4577_v58 = vld [vmem:[%s5378_s5 + $0xf4] sm:$0xf0] }
 0x145   :  { %2492 = vmatpush.bf16.msrb.mxu0 %v3857_v40  ;;  %v4531_v40 = vld [vmem:[%s5376_s3 + $0x184] sm:$0xf0] }
 0x146   :  { %2505 = vmatpush.bf16.msrb.mxu1 %v3921_v50  ;;  %v4037_v38 = vor.u32 %v4531_v40, %v4036_v32  ;;  %v4094_v50 = vld [vmem:[%s5376_s3 + $0x1f8] sm:$0xf0] }
 0x147   :  { %2518 = vmatpush.bf16.msrb.mxu2 %v3985_v61  ;;  %v4097_v29 = vor.u32 %v4544_v28, %v4094_v50  ;;  %v4534_v61 = vld [vmem:[%s5376_s3 + $0x1a4] sm:$0xf] }
 0x149   :  { %2493 = vmatpush.bf16.msrb.mxu0 %v3849_v53  ;;  %v1889_v5 = vpop.f32.mrf.mxu0  ;;  %v4070_v53 = vld [vmem:[%s5376_s3 + $0x1c8] sm:$0xf0] }
 0x14a   :  { %2506 = vmatpush.bf16.msrb.mxu1 %v3913_v55  ;;  %v1890_v35 = vadd.f32 %v1889_v5, %v1877_v1  ;;  %v4073_v55 = vor.u32 %v4538_v52, %v4070_v53  ;;  %v4532_v1 = vld [vmem:[%s5376_s3 + $0x194] sm:$0xf]  ;;  %v4140_v53 = vld [vmem:[%s5378_s5 + $0x50] sm:$0xf] }
 0x14b   :  { %2519 = vmatpush.bf16.msrb.mxu2 %v3977_v33  ;;  %v4057_v33 = vor.u32 %v4534_v61, %v4054_v62  ;;  %v4576_v61 = vld [vmem:[%s5378_s5 + $0xf4] sm:$0xf]  ;;  %v4222_v62 = vld [vmem:[%s5378_s5 + $0xf8] sm:$0xf0] }
 0x14c   :  { %2494 = vmatmul.bf16.vlgmr.msrb.gmra.mxu0 %v4916_v39  ;;  %v4543_v39 = vld [vmem:[%s5376_s3 + $0x1e4] sm:$0xf0]  ;;  %v1902_v34 = vpop.f32.mrf.mxu1 }
 0x14d   :  { %2507 = vmatmul.bf16.vlgmr.msrb.gmra.mxu1 %v4914_v36  ;;  %v4085_v3 = vor.u32 %v4543_v39, %v4084_v2  ;;  %v4541_v36 = vld [vmem:[%s5376_s3 + $0x1d4] sm:$0xf0]  ;;  %v1903_v42 = vadd.f32 %v1902_v34, %v1890_v35  ;;  %v4049_v39 = vor.u32 %v4532_v1, %v4046_v27  ;;  %v4555_v1 = vld [vmem:[%s5378_s5 + $0x44] sm:$0xf0]  ;;  %v4225_v27 = vor.u32 %v4576_v61, %v4222_v62  ;;  %v4180_v61 = vld [vmem:[%s5378_s5 + $0xa0] sm:$0xf] }
 0x14e   :  { %v4077_v41 = vor.u32 %v4541_v36, %v4076_v4  ;;  %v4038_v4 = vld [vmem:[%s5376_s3 + $0x188] sm:$0xf0]  ;;  %v4567_v62 = vld [vmem:[%s5378_s5 + $0xa4] sm:$0xf0] }
 0x14f   :  { %2474 = vmatpush.bf16.msra.mxu3 %v4085_v3  ;;  %v4530_v3 = vld [vmem:[%s5376_s3 + $0x184] sm:$0xf] }
 0x150   :  { %v1915_v9 = vpop.f32.mrf.mxu2  ;;  %v4041_v5 = vor.u32 %v4530_v3, %v4038_v4  ;;  %v4134_v3 = vld [vmem:[%s5378_s5 + $0x48] sm:$0xf0]  ;;  %v4575_v4 = vld [vmem:[%s5378_s5 + $0xe4] sm:$0xf0] }
 0x151   :  { %v1916_v12 = vadd.f32 %v1915_v9, %v1903_v42  ;;  %v1891_v16 = vpop.f32.mrf.mxu0 }
 0x153   :  { %2475 = vmatpush.bf16.msra.mxu3 %v4077_v41  ;;  %v1928_v13 = vpop.f32.mrf.mxu3 }
 0x154   :  { %v1929_v15 = vadd.f32 %v1928_v13, %v1916_v12  ;;  %v1904_v17 = vpop.f32.mrf.mxu1 }
 0x156   :  { %v2038_v11 = vmax.f32 %v1929_v15, 0.0 }
 0x157   :  { %2476 = vmatpush.bf16.msra.mxu3 %v4069_v10 }
 0x158   :  { %v2042_v21 = vpack.c.bf16 %v2038_v11, %v2038_v11  ;;  %v1917_v22 = vpop.f32.mrf.mxu2  ;;  %v2108_v11 = vld [vmem:[%s5377_s4] sm:$0x3] }
 0x159   :  { %v2110_v19 = vperm.slane %v2108_v11, 0  ;;  %v2111_v25 = vperm.slane %v2108_v11, 1 }
 0x15a   :  { %2468 = vmatmul.bf16.vlgmr.msra.gmra.mxu2 %v2042_v21 }
 0x15b   :  { %2477 = vmatpush.bf16.msra.mxu3 %v4061_v18  ;;  %v1930_v37 = vpop.f32.mrf.mxu3 }
 0x15f   :  { %2478 = vmatpush.bf16.msra.mxu3 %v4053_v23 }
 0x163   :  { %2479 = vmatpush.bf16.msra.mxu3 %v4045_v26 }
 0x167   :  { %2480 = vmatpush.bf16.msra.mxu3 %v4037_v38 }
 0x169   :  { %v1941_v43 = vpop.f32.mrf.mxu0 }
 0x16a   :  { %2520 = vmatmul.bf16.vlgmr.msrb.gmra.mxu2 %v2042_v21  ;;  %v1942_v2 = vadd.f32 %v1941_v43, %v335_v59 }
 0x16b   :  { %2525 = vmatpush.bf16.msrb.mxu3 %v4097_v29  ;;  %v4156_v29 = vld [vmem:[%s5378_s5 + $0x70] sm:$0xf] }
 0x16c   :  { %v1954_v45 = vpop.f32.mrf.mxu1  ;;  %v4157_v43 = vor.u32 %v4561_v30, %v4156_v29  ;;  %v4206_v29 = vld [vmem:[%s5378_s5 + $0xd8] sm:$0xf0] }
 0x16d   :  { %v1955_v36 = vadd.f32 %v1954_v45, %v1942_v2  ;;  %v4148_v45 = vld [vmem:[%s5378_s5 + $0x60] sm:$0xf] }
 0x16e   :  { %2740 = vmatpush.bf16.msra.mxu0 %v4157_v43  ;;  %v4212_v2 = vld [vmem:[%s5378_s5 + $0xe0] sm:$0xf]  ;;  %v4547_v43 = vld [vmem:[%s5378_s5 + $0x4] sm:$0xf0] }
 0x16f   :  { %2526 = vmatpush.bf16.msrb.mxu3 %v4089_v44  ;;  %v4158_v44 = vld [vmem:[%s5378_s5 + $0x78] sm:$0xf0] }
 0x170   :  { %v1967_v49 = vpop.f32.mrf.mxu2  ;;  %v4161_v47 = vor.u32 %v4560_v31, %v4158_v44  ;;  %v4100_v31 = vld [vmem:[%s5378_s5] sm:$0xf] }
 0x171   :  { %v1943_v54 = vpop.f32.mrf.mxu0  ;;  %v1968_v35 = vadd.f32 %v1967_v49, %v1955_v36  ;;  %v4150_v49 = vld [vmem:[%s5378_s5 + $0x68] sm:$0xf0]  ;;  %v4213_v36 = vor.u32 %v4575_v4, %v4212_v2  ;;  %v4196_v44 = vld [vmem:[%s5378_s5 + $0xc0] sm:$0xf]  ;;  %v4172_v2 = vld [vmem:[%s5378_s5 + $0x90] sm:$0xf] }
 0x172   :  { %2766 = vmatpush.bf16.msra.mxu2 %v4161_v47  ;;  %v4557_v54 = vld [vmem:[%s5378_s5 + $0x54] sm:$0xf0]  ;;  %v4546_v47 = vld [vmem:[%s5378_s5 + $0x4] sm:$0xf] }
 0x173   :  { %v1980_v51 = vpop.f32.mrf.mxu3  ;;  %2527 = vmatpush.bf16.msrb.mxu3 %v4081_v48  ;;  %v4558_v48 = vld [vmem:[%s5378_s5 + $0x64] sm:$0xf]  ;;  %v4141_v59 = vor.u32 %v4557_v54, %v4140_v53  ;;  %v4198_v53 = vld [vmem:[%s5378_s5 + $0xc8] sm:$0xf0] }
 0x174   :  { %v1956_v56 = vpop.f32.mrf.mxu1  ;;  %v1981_v34 = vadd.f32 %v1980_v51, %v1968_v35  ;;  %v4149_v51 = vor.u32 %v4559_v46, %v4148_v45  ;;  %v4153_v52 = vor.u32 %v4558_v48, %v4150_v49  ;;  %v4214_v35 = vld [vmem:[%s5378_s5 + $0xe8] sm:$0xf0]  ;;  %v4101_v45 = vor.u32 %v4547_v43, %v4100_v31  ;;  %v4571_v46 = vld [vmem:[%s5378_s5 + $0xc4] sm:$0xf0] }
 0x175   :  { %v4142_v56 = vld [vmem:[%s5378_s5 + $0x58] sm:$0xf0]  ;;  %v4102_v48 = vld [vmem:[%s5378_s5 + $0x8] sm:$0xf0]  ;;  %v4197_v49 = vor.u32 %v4571_v46, %v4196_v44 }
 0x176   :  { %2741 = vmatpush.bf16.msra.mxu0 %v4149_v51  ;;  %2767 = vmatpush.bf16.msra.mxu2 %v4153_v52  ;;  %v4105_v51 = vor.u32 %v4546_v47, %v4102_v48  ;;  %v4570_v52 = vld [vmem:[%s5378_s5 + $0xc4] sm:$0xf] }
 0x177   :  { %2528 = vmatpush.bf16.msrb.mxu3 %v4073_v55  ;;  %v4556_v55 = vld [vmem:[%s5378_s5 + $0x54] sm:$0xf]  ;;  %v4201_v54 = vor.u32 %v4570_v52, %v4198_v53 }
 0x178   :  { %v1969_v63 = vpop.f32.mrf.mxu2 }
 0x17a   :  { %2742 = vmatpush.bf16.msra.mxu0 %v4141_v59  ;;  %v4190_v59 = vld [vmem:[%s5378_s5 + $0xb8] sm:$0xf0] }
 0x17b   :  { %v1982_v0 = vpop.f32.mrf.mxu3  ;;  %2529 = vmatpush.bf16.msrb.mxu3 %v4065_v60  ;;  %v4221_v60 = vor.u32 %v4577_v58, %v4220_v57  ;;  %v4568_v57 = vld [vmem:[%s5378_s5 + $0xb4] sm:$0xf] }
 0x17c   :  { %v4145_v0 = vor.u32 %v4556_v55, %v4142_v56  ;;  %v4188_v55 = vld [vmem:[%s5378_s5 + $0xb0] sm:$0xf]  ;;  %v4569_v56 = vld [vmem:[%s5378_s5 + $0xb4] sm:$0xf0] }
 0x17d   :  { %2753 = vmatpush.bf16.msra.mxu1 %v4221_v60  ;;  %v4189_v58 = vor.u32 %v4569_v56, %v4188_v55  ;;  %v4193_v60 = vor.u32 %v4568_v57, %v4190_v59 }
 0x17e   :  { %2768 = vmatpush.bf16.msra.mxu2 %v4145_v0  ;;  %v4566_v0 = vld [vmem:[%s5378_s5 + $0xa4] sm:$0xf] }
 0x17f   :  { %2530 = vmatpush.bf16.msrb.mxu3 %v4057_v33  ;;  %v4132_v33 = vld [vmem:[%s5378_s5 + $0x40] sm:$0xf] }
 0x181   :  { %2754 = vmatpush.bf16.msra.mxu1 %v4213_v36  ;;  %v4174_v36 = vld [vmem:[%s5378_s5 + $0x98] sm:$0xf0] }
 0x183   :  { %2531 = vmatpush.bf16.msrb.mxu3 %v4049_v39  ;;  %v4554_v39 = vld [vmem:[%s5378_s5 + $0x44] sm:$0xf] }
 0x187   :  { %2532 = vmatpush.bf16.msrb.mxu3 %v4041_v5  ;;  %v4574_v5 = vld [vmem:[%s5378_s5 + $0xe4] sm:$0xf] }
 0x189   :  { %v1993_v41 = vpop.f32.mrf.mxu0 }
 0x18a   :  { %v2006_v42 = vpop.f32.mrf.mxu1  ;;  %v1994_v7 = vadd.f32 %v1993_v41, %v1981_v34  ;;  %v4133_v34 = vor.u32 %v4555_v1, %v4132_v33  ;;  %v4217_v41 = vor.u32 %v4574_v5, %v4214_v35  ;;  %v4182_v33 = vld [vmem:[%s5378_s5 + $0xa8] sm:$0xf0]  ;;  %v4181_v1 = vor.u32 %v4567_v62, %v4180_v61  ;;  %v4164_v35 = vld [vmem:[%s5378_s5 + $0x80] sm:$0xf] }
 0x18c   :  { %v2007_v8 = vadd.f32 %v2006_v42, %v1994_v7  ;;  %v4137_v42 = vor.u32 %v4554_v39, %v4134_v3  ;;  %v4124_v7 = vld [vmem:[%s5378_s5 + $0x30] sm:$0xf]  ;;  %2743 = vmatpush.bf16.msra.mxu0 %v4133_v34  ;;  %v4565_v39 = vld [vmem:[%s5378_s5 + $0x94] sm:$0xf0]  ;;  %v4564_v3 = vld [vmem:[%s5378_s5 + $0x94] sm:$0xf] }
 0x18d   :  { %v4173_v4 = vor.u32 %v4565_v39, %v4172_v2  ;;  %v4177_v5 = vor.u32 %v4564_v3, %v4174_v36  ;;  %v4563_v34 = vld [vmem:[%s5378_s5 + $0x84] sm:$0xf0] }
 0x18e   :  { %2769 = vmatpush.bf16.msra.mxu2 %v4137_v42  ;;  %v4165_v42 = vor.u32 %v4563_v34, %v4164_v35 }
 0x191   :  { %v2019_v9 = vpop.f32.mrf.mxu2  ;;  %v1995_v13 = vpop.f32.mrf.mxu0 }
 0x192   :  { %v2020_v10 = vadd.f32 %v2019_v9, %v2007_v8  ;;  %v2032_v12 = vpop.f32.mrf.mxu3  ;;  %v2008_v14 = vpop.f32.mrf.mxu1  ;;  %v4553_v8 = vld [vmem:[%s5378_s5 + $0x34] sm:$0xf0]  ;;  %v4552_v9 = vld [vmem:[%s5378_s5 + $0x34] sm:$0xf] }
 0x194   :  { %v2033_v6 = vadd.f32 %v2032_v12, %v2020_v10  ;;  %v4126_v10 = vld [vmem:[%s5378_s5 + $0x38] sm:$0xf0]  ;;  %v4125_v12 = vor.u32 %v4553_v8, %v4124_v7  ;;  %v4166_v7 = vld [vmem:[%s5378_s5 + $0x88] sm:$0xf0] }
 0x195   :  { %v4129_v14 = vor.u32 %v4552_v9, %v4126_v10 }
 0x196   :  { %v2039_v15 = vmax.f32 %v2033_v6, 0.0  ;;  %v4116_v6 = vld [vmem:[%s5378_s5 + $0x20] sm:$0xf]  ;;  %2744 = vmatpush.bf16.msra.mxu0 %v4125_v12 }
 0x197   :  { %2770 = vmatpush.bf16.msra.mxu2 %v4129_v14 }
 0x198   :  { %v2043_v16 = vpack.c.bf16 %v2039_v15, %v2039_v15  ;;  %v4551_v15 = vld [vmem:[%s5378_s5 + $0x24] sm:$0xf0] }
 0x199   :  { %v2021_v17 = vpop.f32.mrf.mxu2 }
 0x19a   :  { %v2034_v18 = vpop.f32.mrf.mxu3  ;;  %2481 = vmatmul.bf16.vlgmr.msra.gmra.mxu3 %v2043_v16  ;;  %v4118_v17 = vld [vmem:[%s5378_s5 + $0x28] sm:$0xf0] }
 0x19b   :  { %2779 = vmatpush.bf16.msra.mxu3 %v4225_v27  ;;  %v4117_v18 = vor.u32 %v4551_v15, %v4116_v6  ;;  %v4185_v27 = vor.u32 %v4566_v0, %v4182_v33 }
 0x19d   :  { %2745 = vmatpush.bf16.msra.mxu0 %v4117_v18 }
 0x19f   :  { %2780 = vmatpush.bf16.msra.mxu3 %v4217_v41  ;;  %v4562_v41 = vld [vmem:[%s5378_s5 + $0x84] sm:$0xf] }
 0x1a0   :  { %v4169_v8 = vor.u32 %v4562_v41, %v4166_v7 }
 0x1a9   :  { %v2443_v20 = vpop.f32.mrf.mxu0 }
 0x1aa   :  { %v2444_v21 = vadd.f32 %v2443_v20, %v2110_v19  ;;  %v2456_v22 = vpop.f32.mrf.mxu1  ;;  %2533 = vmatmul.bf16.vlgmr.msrb.gmra.mxu3 %v2043_v16  ;;  %v4550_v16 = vld [vmem:[%s5378_s5 + $0x24] sm:$0xf] }
 0x1ab   :  { %v4121_v11 = vor.u32 %v4550_v16, %v4118_v17 }
 0x1ac   :  { %v5163_v23 = vadd.f32 %v2456_v22, %v2444_v21  ;;  %v4108_v21 = vld [vmem:[%s5378_s5 + $0x10] sm:$0xf]  ;;  %v4549_v22 = vld [vmem:[%s5378_s5 + $0x14] sm:$0xf0] }
 0x1ad   :  { %2771 = vmatpush.bf16.msra.mxu2 %v4121_v11 }
 0x1b1   :  { %v2445_v37 = vpop.f32.mrf.mxu0 }
 0x1b2   :  { %v2458_v24 = vpop.f32.mrf.mxu1  ;;  %v4204_v37 = vld [vmem:[%s5378_s5 + $0xd0] sm:$0xf] }
 0x1b3   :  { %v4109_v24 = vor.u32 %v4549_v22, %v4108_v21 }
 0x1b5   :  { %2746 = vmatpush.bf16.msra.mxu0 %v4109_v24 }
 0x1b9   :  { %2747 = vmatpush.bf16.msra.mxu0 %v4101_v45 }
 0x1c9   :  { %v2495_v26 = vpop.f32.mrf.mxu0 }
 0x1ca   :  { %v2496_v32 = vadd.f32 %v2495_v26, %v2111_v25  ;;  %v2508_v40 = vpop.f32.mrf.mxu1  ;;  %v4573_v25 = vld [vmem:[%s5378_s5 + $0xd4] sm:$0xf0]  ;;  %v4548_v26 = vld [vmem:[%s5378_s5 + $0x14] sm:$0xf] }
 0x1cc   :  { %v5165_v38 = vadd.f32 %v2508_v40, %v2496_v32  ;;  %v4110_v32 = vld [vmem:[%s5378_s5 + $0x18] sm:$0xf0]  ;;  %v4205_v40 = vor.u32 %v4573_v25, %v4204_v37 }
 0x1ce   :  { %2755 = vmatpush.bf16.msra.mxu1 %v4205_v40 }
 0x1d1   :  { %v2497_v28 = vpop.f32.mrf.mxu0 }
 0x1d2   :  { %v2510_v50 = vpop.f32.mrf.mxu1  ;;  %v4113_v28 = vor.u32 %v4548_v26, %v4110_v32  ;;  %2756 = vmatpush.bf16.msra.mxu1 %v4197_v49 }
 0x1d3   :  { %v4572_v50 = vld [vmem:[%s5378_s5 + $0xd4] sm:$0xf] }
 0x1d4   :  { %v4209_v30 = vor.u32 %v4572_v50, %v4206_v29  ;;  %2772 = vmatpush.bf16.msra.mxu2 %v4113_v28 }
 0x1d6   :  { %2781 = vmatpush.bf16.msra.mxu3 %v4209_v30  ;;  %2757 = vmatpush.bf16.msra.mxu1 %v4189_v58 }
 0x1d8   :  { %2773 = vmatpush.bf16.msra.mxu2 %v4105_v51 }
 0x1da   :  { %2782 = vmatpush.bf16.msra.mxu3 %v4201_v54  ;;  %2758 = vmatpush.bf16.msra.mxu1 %v4181_v1 }
 0x1dd   :  { %v5215_v63 = vpop.f32.mrf.mxu2 }
 0x1de   :  { %2783 = vmatpush.bf16.msra.mxu3 %v4193_v60  ;;  %2759 = vmatpush.bf16.msra.mxu1 %v4173_v4  ;;  %v2470_v9 = vadd.f32 %v5215_v63, %v5163_v23  ;;  %v2574_v63 = vld [vmem:[%s5379_s6] sm:$0x3] }
 0x1df   :  { %v2576_v25 = vperm.slane %v2574_v63, 0  ;;  %v2577_v26 = vperm.slane %v2574_v63, 1 }
 0x1e2   :  { %2784 = vmatpush.bf16.msra.mxu3 %v4185_v27  ;;  %2760 = vmatpush.bf16.msra.mxu1 %v4165_v42 }
 0x1e5   :  { %v2471_v13 = vpop.f32.mrf.mxu2 }
 0x1e6   :  { %2785 = vmatpush.bf16.msra.mxu3 %v4177_v5 }
 0x1ea   :  { %2786 = vmatpush.bf16.msra.mxu3 %v4169_v8 }
 0x1ed   :  { %v5265_v19 = vpop.f32.mrf.mxu2 }
 0x1ee   :  { %v2522_v15 = vadd.f32 %v5265_v19, %v5165_v38 }
 0x1f5   :  { %v2523_v20 = vpop.f32.mrf.mxu2 }
 0x21d   :  { %v2482_v10 = vpop.f32.mrf.mxu3 }
 0x21e   :  { %v2483_v12 = vadd.f32 %v2482_v10, %v2470_v9 }
 0x220   :  { %v2538_v13 = vmax.f32 %v2483_v12, 0.0 }
 0x222   :  { %v2540_v14 = vpack.c.bf16 %v2538_v13, %v2538_v13 }
 0x224   :  { %2748 = vmatmul.bf16.vlgmr.msra.gmra.mxu0 %v2540_v14  ;;  %2774 = vmatmul.bf16.vlgmr.msra.gmra.mxu2 %v2540_v14 }
 0x225   :  { %v2484_v6 = vpop.f32.mrf.mxu3 }
 0x22d   :  { %v2534_v16 = vpop.f32.mrf.mxu3 }
 0x22e   :  { %v2535_v17 = vadd.f32 %v2534_v16, %v2522_v15 }
 0x230   :  { %v2539_v18 = vmax.f32 %v2535_v17, 0.0 }
 0x232   :  { %v2541_v11 = vpack.c.bf16 %v2539_v18, %v2539_v18 }
 0x234   :  { %2761 = vmatmul.bf16.vlgmr.msra.gmra.mxu1 %v2541_v11  ;;  %2787 = vmatmul.bf16.vlgmr.msra.gmra.mxu3 %v2541_v11 }
 0x235   :  { %v2536_v20 = vpop.f32.mrf.mxu3 }
 0x2a1   :  { %v2749_v21 = vpop.f32.mrf.mxu0 }
 0x2a2   :  { %v2750_v32 = vadd.f32 %v2749_v21, %v2576_v25 }
 0x2a7   :  { %v2775_v22 = vpop.f32.mrf.mxu2 }
 0x2a8   :  { %v2776_v38 = vadd.f32 %v2775_v22, %v2577_v26 }
 0x2a9   :  { %v2751_v23 = vpop.f32.mrf.mxu0 }
 0x2af   :  { %v2777_v37 = vpop.f32.mrf.mxu2 }
 0x2b1   :  { %v2762_v24 = vpop.f32.mrf.mxu1 }
 0x2b2   :  { %v2763_v40 = vadd.f32 %v2762_v24, %v2750_v32 }
 0x2b4   :  { %v2792_v30 = vmax.f32 %v2763_v40, 0.0 }
 0x2b7   :  { %v2788_v19 = vpop.f32.mrf.mxu3 }
 0x2b8   :  { %v2789_v28 = vadd.f32 %v2788_v19, %v2776_v38 }
 0x2b9   :  { %v2764_v50 = vpop.f32.mrf.mxu1 }
 0x2ba   :  { %v2793_v29 = vmax.f32 %v2789_v28, 0.0 }
 0x2bc   :  { %v2796_v31 = vrot.slane %v2793_v29, 6 }
 0x2be   :  { %v2798_v43 = vsel %vm2797_vm0, %v2792_v30, %v2796_v31 }
 0x2bf   :  { %v2790_v44 = vpop.f32.mrf.mxu3  ;;  %2800 = vst [vmem:[#allocation5] sm:$0xf] %v2798_v43 }
 0x2c0   :  { %2811 = dma.vmem_to_hbm [thread:$0]  %s2807_s10, 64, %s2809_s12, [#allocation4]  }
 0x2c1   :  { %4633 = dma.done.wait [#allocation4], 64  }
 0x2c2   :  { %4634 = vsyncadd [#allocation4], 4294967232 }
 0x2c3   :  { %2816 = vsyncpa [#allocation3], 1 }
 0x2c4   :  { %2817 = vsyncpa [#allocation4], 1 }

</bundles_post_ra>
